<compile_context>
chip_gen: v7x
topology: tpu7x:2x2x1
jax: 0.10.0
libtpu: 0.0.40
codegen_flags: <defaults>
</compile_context>

<pallas_src>
import functools

import jax
import jax.numpy as jnp
from jax.experimental import pallas as pl
from jax.experimental.pallas import tpu as pltpu


def _round_up(x, mult):
    return ((x + mult - 1) // mult) * mult


def _padded_tile_bytes(rows, cols, itemsize):
    """VMEM bytes of a (rows, cols) tile after (sublane, 128)-lane padding."""
    sublane = 8 * (4 // itemsize)          # 8 for f32, 16 for bf16
    return (_round_up(max(rows, 1), sublane)
            * _round_up(max(cols, 1), 128) * itemsize)


def _gat_kernel(item_ref, entf_ref, mask_ref, wa1_ref, wa2b_ref, expand_ref,
                seye_ref, wo_ref, bo_ref, out_ref, *, alpha):
    # item_ref  : (tn, F)    bf16     entf_ref : (tn, M*F) bf16 (lane-dense)
    # mask_ref  : (tn, M)    f32      additive bias: 0 (edge) / -9e15 (no edge)
    # wa1_ref   : (F, 1)     bf16     == W @ a[:H]
    # wa2b_ref  : (M*F, M)   bf16     block-diag of (W @ a[H:])
    # expand_ref: (M, M*F)   bf16     expand[m, m*F:(m+1)*F] = 1 (lane-expand att)
    # seye_ref  : (M*F, F)   bf16     vertically stacked identities (sum over M)
    # wo_ref    : (H, H)     bf16     (pre-transposed: kernel computes h @ wo)
    # bo_ref    : (1, H)     f32      out_ref : (tn, H) f32
    item_bf = item_ref[...]
    ent = entf_ref[...]
    mask = mask_ref[...]

    # --- attention logits: leaky_relu(item@(W a1) + ent@(W a2)) --------------
    e_item = jnp.dot(item_bf, wa1_ref[...],
                     preferred_element_type=jnp.float32)           # (tn, 1)
    e_ent = jnp.dot(ent, wa2b_ref[...],
                    preferred_element_type=jnp.float32)            # (tn, M)
    e = e_ent + e_item                                             # broadcast
    e = jnp.where(e > 0, e, alpha * e)                             # LeakyReLU

    # --- masked softmax over M (additive -9e15 bias from the wrapper) --------
    logits = e + mask
    logits = logits - jnp.max(logits, axis=1, keepdims=True)
    p = jnp.exp(logits)
    s = jnp.sum(p, axis=1, keepdims=True)                          # (tn, 1)
    inv = pl.reciprocal(s, approx=True)
    inv = inv * (2.0 - s * inv)        # one Newton step: near-exact, EUP-driven
    att = p * inv                                                  # (tn, M) f32

    # --- attention-weighted neighbor aggregation (MXU) -----------------------
    att_rep = jnp.dot(att.astype(jnp.bfloat16), expand_ref[...],
                      preferred_element_type=jnp.float32)          # (tn, M*F)
    # Multiply in f32 (v5e VPU has no bf16 ALUs); back to bf16 for the MXU.
    prod = (ent.astype(jnp.float32) * att_rep).astype(jnp.bfloat16)
    agg = jnp.dot(prod, seye_ref[...],
                  preferred_element_type=jnp.float32)              # (tn, F)

    # --- residual + ELU (concat=True branch); overflow-safe ------------------
    hp = agg + item_bf.astype(jnp.float32)
    hp = jnp.where(hp > 0, hp, jnp.exp(jnp.minimum(hp, 0.0)) - 1.0)

    # --- output Linear: h @ Wo^T + b -----------------------------------------
    out = jnp.dot(hp.astype(jnp.bfloat16), wo_ref[...],
                  preferred_element_type=jnp.float32) + bo_ref[...]
    out_ref[...] = out.astype(out_ref.dtype)


# Explicit scoped-VMEM limit handed to Mosaic (overrides v5e's 16 MiB default;
# well under v7x's 64 MiB physical VMEM per TensorCore) and the budget our own
# accounting is allowed to use (headroom left for compiler scratch).
_VMEM_LIMIT = 32 * 1024 * 1024
_VMEM_BUDGET = 24 * 1024 * 1024
_ALIGN = 16   # row-tile alignment (bf16 sublane packing)


@functools.partial(jax.jit,
                   static_argnames=("alpha", "block_n", "single_buffer_consts"))
def _gat_forward_impl(item_embs, entity_embs, adj, params, *, alpha, block_n,
                      single_buffer_consts):
    n, f = item_embs.shape
    m = entity_embs.shape[1]
    w = params["W"]                                   # (F, H)
    h = w.shape[1]
    assert f == h, "residual `+ item_embs` requires nfeat == nhid"
    a = params["a"]                                   # (2H, 1)

    # Fold W into the attention vector: [Wh||We] @ a == item@(W@a1) + ent@(W@a2).
    wa1 = (w @ a[:h]).astype(jnp.bfloat16)                            # (F, 1)
    wa2 = (w @ a[h:]).astype(jnp.float32)                             # (F, 1)
    eye_m = jnp.eye(m, dtype=jnp.float32)
    wa2_block = jnp.kron(eye_m, wa2).astype(jnp.bfloat16)             # (M*F, M)
    expand = jnp.kron(eye_m,
                      jnp.ones((1, f), jnp.float32)).astype(jnp.bfloat16)  # (M, M*F)
    stacked_eye = jnp.tile(jnp.eye(f, dtype=jnp.float32),
                           (m, 1)).astype(jnp.bfloat16)               # (M*F, F)
    wo = params["out_w"].T.astype(jnp.bfloat16)                       # (H, H)
    bo = params["out_b"].reshape(1, h).astype(jnp.float32)

    # bf16 HBM streams; entity lane-dense (N, M*F) (free reshape of contiguous).
    ent_flat = entity_embs.reshape(n, m * f).astype(jnp.bfloat16)
    item_bf = item_embs.astype(jnp.bfloat16)
    # Additive attention mask: 0 where edge, -9e15 where not.
    mask = jnp.where(adj > 0, 0.0, -9.0e15).astype(jnp.float32)

    # --- tile-size selection / VMEM budgeting --------------------------------
    block_n = max(_ALIGN, (block_n // _ALIGN) * _ALIGN)
    n_align = _round_up(n, _ALIGN)
    if n_align >= 2 * _ALIGN:
        # Guarantee >= 2 grid steps so ("parallel",) uses both v7x TensorCores.
        block_n = min(block_n, _round_up((n_align + 1) // 2, _ALIGN))
    else:
        block_n = _ALIGN

    cbuf = 1 if single_buffer_consts else 2

    def _footprint(bn):
        per_step = (_padded_tile_bytes(bn, f, 2)           # item   (bf16)
                    + _padded_tile_bytes(bn, m * f, 2)     # entity (bf16)
                    + _padded_tile_bytes(bn, m, 4)         # mask   (f32)
                    + _padded_tile_bytes(bn, h, 4))        # out    (f32)
        consts = (_padded_tile_bytes(f, 1, 2) + _padded_tile_bytes(m * f, m, 2)
                  + _padded_tile_bytes(m, m * f, 2)
                  + _padded_tile_bytes(m * f, f, 2)
                  + _padded_tile_bytes(h, h, 2) + _padded_tile_bytes(1, h, 4))
        # In-kernel (bn, M*F) f32 intermediates: ent upcast, att_rep, product.
        scratch = 3 * _padded_tile_bytes(bn, m * f, 4)
        return 2 * per_step + cbuf * consts + scratch

    while block_n > _ALIGN and _footprint(block_n) > _VMEM_BUDGET:
        block_n = max(_ALIGN, (block_n // 2 // _ALIGN) * _ALIGN)

    # Pad N to a multiple of block_n.  Padded rows (zero item/entity, zero
    # mask) produce out == bias and are sliced off below.
    n_pad = _round_up(n, block_n)
    if n_pad != n:
        pad = n_pad - n
        item_bf = jnp.pad(item_bf, ((0, pad), (0, 0)))
        ent_flat = jnp.pad(ent_flat, ((0, pad), (0, 0)))
        mask = jnp.pad(mask, ((0, pad), (0, 0)))

    grid = (n_pad // block_n,)

    const_kw = {}
    if single_buffer_consts:
        # Constants are fetched once (constant index_map); single-buffer them.
        const_kw = dict(pipeline_mode=pl.Buffered(1))

    def _const_spec(shape):
        return pl.BlockSpec(shape, lambda i: (0, 0), **const_kw)

    kernel = functools.partial(_gat_kernel, alpha=alpha)
    out = pl.pallas_call(
        kernel,
        out_shape=jax.ShapeDtypeStruct((n_pad, h), jnp.float32),
        grid_spec=pltpu.PrefetchScalarGridSpec(
            num_scalar_prefetch=0,
            grid=grid,
            in_specs=[
                pl.BlockSpec((block_n, f), lambda i: (i, 0)),        # item
                pl.BlockSpec((block_n, m * f), lambda i: (i, 0)),    # entity
                pl.BlockSpec((block_n, m), lambda i: (i, 0)),        # adj mask
                _const_spec((f, 1)),                                 # W@a1
                _const_spec((m * f, m)),                             # blockdiag(W@a2)
                _const_spec((m, m * f)),                             # att expander
                _const_spec((m * f, f)),                             # stacked identity
                _const_spec((h, h)),                                 # Wo^T
                _const_spec((1, h)),                                 # bias
            ],
            out_specs=pl.BlockSpec((block_n, h), lambda i: (i, 0)),
        ),
        compiler_params=pltpu.CompilerParams(
            dimension_semantics=("parallel",),
            vmem_limit_bytes=_VMEM_LIMIT),
    )(item_bf, ent_flat, mask, wa1, wa2_block, expand, stacked_eye, wo, bo)
    return out[:n]


_BUFFERED1_OK = True


def gat_forward(item_embs, entity_embs, adj, params, *, alpha=0.2, block_n=1024):
    """Public entry point; falls back if pl.Buffered(1) is unsupported."""
    global _BUFFERED1_OK
    if _BUFFERED1_OK:
        try:
            return _gat_forward_impl(item_embs, entity_embs, adj, params,
                                     alpha=alpha, block_n=block_n,
                                     single_buffer_consts=True)
        except Exception:
            # This jax/Mosaic build rejects single-buffered BlockSpecs; use the
            # default double-buffering (perf-neutral: constants DMA only once).
            _BUFFERED1_OK = False
    return _gat_forward_impl(item_embs, entity_embs, adj, params,
                             alpha=alpha, block_n=block_n,
                             single_buffer_consts=False)


def _reference_forward(item_embs, entity_embs, adj, params, alpha=0.2):
    """Pure-JAX f32 reference of the same semantics (eval mode)."""
    w, a = params["W"], params["a"]
    wh = item_embs @ w                                   # (N, H)
    we = jnp.einsum("nmf,fh->nmh", entity_embs, w)       # (N, M, H)
    a_input = jnp.concatenate(
        [jnp.broadcast_to(wh[:, None, :], we.shape), we], axis=-1)
    e = jnp.squeeze(a_input @ a, axis=2)
    e = jnp.where(e > 0, e, alpha * e)
    logits = jnp.where(adj > 0, e, -9.0e15)
    att = jax.nn.softmax(logits, axis=1)
    agg = jnp.einsum("nm,nmf->nf", att, entity_embs)
    hp = agg + item_embs
    hp = jnp.where(hp > 0, hp, jnp.exp(jnp.minimum(hp, 0.0)) - 1.0)   # elu
    return hp @ params["out_w"].T + params["out_b"]


def _xavier_uniform(key, shape, gain):
    fan_in, fan_out = shape[0], shape[1]
    bound = gain * jnp.sqrt(6.0 / (fan_in + fan_out))
    return jax.random.uniform(key, shape, jnp.float32, -bound, bound)


if __name__ == "__main__":
    # Small shapes consistent with the module: nfeat == nhid (required for the
    # residual `+ item_embs` and the out Linear to typecheck).  N is not a
    # multiple of the tile size to exercise the padded-tail path.
    N, M = 200, 16
    NFEAT = NHID = 32
    ALPHA = 0.2

    key = jax.random.PRNGKey(0)
    k_item, k_ent, k_adj, k_w, k_a, k_ow, k_ob = jax.random.split(key, 7)

    item_embs = jax.random.normal(k_item, (N, NFEAT), jnp.float32)
    entity_embs = jax.random.normal(k_ent, (N, M, NFEAT), jnp.float32)
    adj = (jax.random.uniform(k_adj, (N, M)) > 0.3).astype(jnp.float32)

    params = {
        # GraphAttentionLayer params (fc is only used in forward_relation).
        "W": _xavier_uniform(k_w, (NFEAT, NHID), gain=1.414),
        "a": _xavier_uniform(k_a, (2 * NHID, 1), gain=1.414),
        # GAT.out Linear(nhid * num_heads, nhid)
        "out_w": jax.random.uniform(k_ow, (NHID, NHID), jnp.float32,
                                    -1.0 / jnp.sqrt(NHID), 1.0 / jnp.sqrt(NHID)),
        "out_b": jax.random.uniform(k_ob, (NHID,), jnp.float32,
                                    -1.0 / jnp.sqrt(NHID), 1.0 / jnp.sqrt(NHID)),
    }

    ref = _reference_forward(item_embs, entity_embs, adj, params, alpha=ALPHA)

    # block_n=64: multi-step grid with a zero-padded tail tile.
    # block_n=1024: capped to two ~112-row tiles (>=2 grid steps for v7x).
    for bn in (64, 1024):
        out = gat_forward(item_embs, entity_embs, adj, params,
                          alpha=ALPHA, block_n=bn)
        out = jax.block_until_ready(out)
        if out.shape != ref.shape:
            raise AssertionError(f"shape mismatch: {out.shape} vs {ref.shape}")
        # bf16 operand streams -> tolerance is bf16-appropriate (review note).
        if not jnp.allclose(out, ref, atol=8e-2, rtol=8e-2):
            err = float(jnp.max(jnp.abs(out - ref)))
            raise AssertionError(
                f"Pallas kernel output mismatch vs JAX reference "
                f"(block_n={bn}, max abs err={err})")

    print("KERNEL_OK")
</pallas_src>

<mosaic_0001>
module attributes {stable_mosaic.version = 11 : i64} {
  func.func @_gat_kernel(%arg0: i32, %arg1: memref<64x32xbf16, #tpu.memory_space<vmem>>, %arg2: memref<64x512xbf16, #tpu.memory_space<vmem>>, %arg3: memref<64x16xf32, #tpu.memory_space<vmem>>, %arg4: memref<32x1xbf16, #tpu.memory_space<vmem>>, %arg5: memref<512x16xbf16, #tpu.memory_space<vmem>>, %arg6: memref<16x512xbf16, #tpu.memory_space<vmem>>, %arg7: memref<512x32xbf16, #tpu.memory_space<vmem>>, %arg8: memref<32x32xbf16, #tpu.memory_space<vmem>>, %arg9: memref<1x32xf32, #tpu.memory_space<vmem>>, %arg10: memref<64x32xf32, #tpu.memory_space<vmem>>) attributes {dimension_semantics = [#tpu.dimension_semantics<parallel>], iteration_bounds = array<i64: 4>, scalar_prefetch = 0 : i64, scratch_operands = 0 : i64, tpu.core_type = #tpu.core_type<tc>, window_params = [{transform_indices = @transform_0, window_bounds = array<i64: 64, 32>}, {transform_indices = @transform_1, window_bounds = array<i64: 64, 512>}, {transform_indices = @transform_2, window_bounds = array<i64: 64, 16>}, {pipeline_mode = #tpu.pipeline_mode<synchronous>, transform_indices = @transform_3, window_bounds = array<i64: 32, 1>}, {pipeline_mode = #tpu.pipeline_mode<synchronous>, transform_indices = @transform_4, window_bounds = array<i64: 512, 16>}, {pipeline_mode = #tpu.pipeline_mode<synchronous>, transform_indices = @transform_5, window_bounds = array<i64: 16, 512>}, {pipeline_mode = #tpu.pipeline_mode<synchronous>, transform_indices = @transform_6, window_bounds = array<i64: 512, 32>}, {pipeline_mode = #tpu.pipeline_mode<synchronous>, transform_indices = @transform_7, window_bounds = array<i64: 32, 32>}, {pipeline_mode = #tpu.pipeline_mode<synchronous>, transform_indices = @transform_8, window_bounds = array<i64: 1, 32>}, {transform_indices = @transform_9, window_bounds = array<i64: 64, 32>}]} {
    %c0 = arith.constant 0 : index
    %c0_0 = arith.constant 0 : index
    %0 = vector.load %arg1[%c0, %c0_0] : memref<64x32xbf16, #tpu.memory_space<vmem>>, vector<64x32xbf16>
    %c0_1 = arith.constant 0 : index
    %c0_2 = arith.constant 0 : index
    %1 = vector.load %arg2[%c0_1, %c0_2] : memref<64x512xbf16, #tpu.memory_space<vmem>>, vector<64x512xbf16>
    %c0_3 = arith.constant 0 : index
    %c0_4 = arith.constant 0 : index
    %2 = vector.load %arg3[%c0_3, %c0_4] : memref<64x16xf32, #tpu.memory_space<vmem>>, vector<64x16xf32>
    %c0_5 = arith.constant 0 : index
    %c0_6 = arith.constant 0 : index
    %3 = vector.load %arg4[%c0_5, %c0_6] : memref<32x1xbf16, #tpu.memory_space<vmem>>, vector<32x1xbf16>
    %cst = arith.constant dense<0.000000e+00> : vector<64x1xf32>
    %4 = tpu.matmul %0, %3, %cst {dimension_numbers = #tpu.dot_dimension_numbers<[1], [0], [0], [1], [0, 0, 1, 1], [], []>} : vector<64x32xbf16>, vector<32x1xbf16>, vector<64x1xf32> -> vector<64x1xf32>
    %c0_7 = arith.constant 0 : index
    %c0_8 = arith.constant 0 : index
    %5 = vector.load %arg5[%c0_7, %c0_8] : memref<512x16xbf16, #tpu.memory_space<vmem>>, vector<512x16xbf16>
    %cst_9 = arith.constant dense<0.000000e+00> : vector<64x16xf32>
    %6 = tpu.matmul %1, %5, %cst_9 {dimension_numbers = #tpu.dot_dimension_numbers<[1], [0], [0], [1], [0, 0, 1, 1], [], []>} : vector<64x512xbf16>, vector<512x16xbf16>, vector<64x16xf32> -> vector<64x16xf32>
    %7 = vector.broadcast %4 : vector<64x1xf32> to vector<64x16xf32>
    %8 = arith.addf %6, %7 : vector<64x16xf32>
    %cst_10 = arith.constant 0.000000e+00 : f32
    %9 = vector.broadcast %cst_10 : f32 to vector<64x16xf32>
    %10 = arith.cmpf ogt, %8, %9 : vector<64x16xf32>
    %cst_11 = arith.constant 2.000000e-01 : f32
    %11 = vector.broadcast %cst_11 : f32 to vector<64x16xf32>
    %12 = arith.mulf %11, %8 : vector<64x16xf32>
    %13 = arith.select %10, %8, %12 : vector<64x16xi1>, vector<64x16xf32>
    %14 = arith.addf %13, %2 : vector<64x16xf32>
    %cst_12 = arith.constant dense<0xFF800000> : vector<64xf32>
    %15 = vector.multi_reduction <maximumf>, %14, %cst_12 [1] : vector<64x16xf32> to vector<64xf32>
    %16 = vector.shape_cast %15 : vector<64xf32> to vector<64x1xf32>
    %17 = vector.broadcast %16 : vector<64x1xf32> to vector<64x16xf32>
    %18 = arith.subf %14, %17 : vector<64x16xf32>
    %19 = math.exp %18 : vector<64x16xf32>
    %cst_13 = arith.constant dense<0.000000e+00> : vector<64xf32>
    %20 = vector.multi_reduction <add>, %19, %cst_13 [1] : vector<64x16xf32> to vector<64xf32>
    %21 = vector.shape_cast %20 : vector<64xf32> to vector<64x1xf32>
    %22 = tpu.reciprocal %21 {approx = true} : vector<64x1xf32> -> vector<64x1xf32>
    %23 = arith.mulf %21, %22 : vector<64x1xf32>
    %cst_14 = arith.constant 2.000000e+00 : f32
    %24 = vector.broadcast %cst_14 : f32 to vector<64x1xf32>
    %25 = arith.subf %24, %23 : vector<64x1xf32>
    %26 = arith.mulf %22, %25 : vector<64x1xf32>
    %27 = vector.broadcast %26 : vector<64x1xf32> to vector<64x16xf32>
    %28 = arith.mulf %19, %27 : vector<64x16xf32>
    %29 = arith.truncf %28 : vector<64x16xf32> to vector<64x16xbf16>
    %c0_15 = arith.constant 0 : index
    %c0_16 = arith.constant 0 : index
    %30 = vector.load %arg6[%c0_15, %c0_16] : memref<16x512xbf16, #tpu.memory_space<vmem>>, vector<16x512xbf16>
    %cst_17 = arith.constant dense<0.000000e+00> : vector<64x512xf32>
    %31 = tpu.matmul %29, %30, %cst_17 {dimension_numbers = #tpu.dot_dimension_numbers<[1], [0], [0], [1], [0, 0, 1, 1], [], []>} : vector<64x16xbf16>, vector<16x512xbf16>, vector<64x512xf32> -> vector<64x512xf32>
    %32 = arith.extf %1 : vector<64x512xbf16> to vector<64x512xf32>
    %33 = arith.mulf %32, %31 : vector<64x512xf32>
    %34 = arith.truncf %33 : vector<64x512xf32> to vector<64x512xbf16>
    %c0_18 = arith.constant 0 : index
    %c0_19 = arith.constant 0 : index
    %35 = vector.load %arg7[%c0_18, %c0_19] : memref<512x32xbf16, #tpu.memory_space<vmem>>, vector<512x32xbf16>
    %cst_20 = arith.constant dense<0.000000e+00> : vector<64x32xf32>
    %36 = tpu.matmul %34, %35, %cst_20 {dimension_numbers = #tpu.dot_dimension_numbers<[1], [0], [0], [1], [0, 0, 1, 1], [], []>} : vector<64x512xbf16>, vector<512x32xbf16>, vector<64x32xf32> -> vector<64x32xf32>
    %37 = arith.extf %0 : vector<64x32xbf16> to vector<64x32xf32>
    %38 = arith.addf %36, %37 : vector<64x32xf32>
    %cst_21 = arith.constant 0.000000e+00 : f32
    %39 = vector.broadcast %cst_21 : f32 to vector<64x32xf32>
    %40 = arith.cmpf ogt, %38, %39 : vector<64x32xf32>
    %cst_22 = arith.constant 0.000000e+00 : f32
    %41 = vector.broadcast %cst_22 : f32 to vector<64x32xf32>
    %42 = arith.minimumf %38, %41 : vector<64x32xf32>
    %43 = math.exp %42 : vector<64x32xf32>
    %cst_23 = arith.constant 1.000000e+00 : f32
    %44 = vector.broadcast %cst_23 : f32 to vector<64x32xf32>
    %45 = arith.subf %43, %44 : vector<64x32xf32>
    %46 = arith.select %40, %38, %45 : vector<64x32xi1>, vector<64x32xf32>
    %47 = arith.truncf %46 : vector<64x32xf32> to vector<64x32xbf16>
    %c0_24 = arith.constant 0 : index
    %c0_25 = arith.constant 0 : index
    %48 = vector.load %arg8[%c0_24, %c0_25] : memref<32x32xbf16, #tpu.memory_space<vmem>>, vector<32x32xbf16>
    %cst_26 = arith.constant dense<0.000000e+00> : vector<64x32xf32>
    %49 = tpu.matmul %47, %48, %cst_26 {dimension_numbers = #tpu.dot_dimension_numbers<[1], [0], [0], [1], [0, 0, 1, 1], [], []>} : vector<64x32xbf16>, vector<32x32xbf16>, vector<64x32xf32> -> vector<64x32xf32>
    %c0_27 = arith.constant 0 : index
    %c0_28 = arith.constant 0 : index
    %50 = vector.load %arg9[%c0_27, %c0_28] : memref<1x32xf32, #tpu.memory_space<vmem>>, vector<1x32xf32>
    %51 = vector.broadcast %50 : vector<1x32xf32> to vector<64x32xf32>
    %52 = arith.addf %49, %51 : vector<64x32xf32>
    %c0_29 = arith.constant 0 : index
    %c0_30 = arith.constant 0 : index
    %53 = vector.load %arg10[%c0_29, %c0_30] : memref<64x32xf32, #tpu.memory_space<vmem>>, vector<64x32xf32>
    tpu.vector_store %arg10[%c0_29, %c0_30], %52 {strides = array<i32>} : memref<64x32xf32, #tpu.memory_space<vmem>>, vector<64x32xf32>,
    return
  }
  func.func @transform_0(%arg0: i32) -> (i32, i32) {
    %c0_i32 = arith.constant 0 : i32
    %c0_i32_0 = arith.constant 0 : i32
    return %arg0, %c0_i32 : i32, i32
  }
  func.func @transform_1(%arg0: i32) -> (i32, i32) {
    %c0_i32 = arith.constant 0 : i32
    %c0_i32_0 = arith.constant 0 : i32
    return %arg0, %c0_i32 : i32, i32
  }
  func.func @transform_2(%arg0: i32) -> (i32, i32) {
    %c0_i32 = arith.constant 0 : i32
    %c0_i32_0 = arith.constant 0 : i32
    return %arg0, %c0_i32 : i32, i32
  }
  func.func @transform_3(%arg0: i32) -> (i32, i32) {
    %c0_i32 = arith.constant 0 : i32
    %c0_i32_0 = arith.constant 0 : i32
    %c0_i32_1 = arith.constant 0 : i32
    return %c0_i32, %c0_i32_0 : i32, i32
  }
  func.func @transform_4(%arg0: i32) -> (i32, i32) {
    %c0_i32 = arith.constant 0 : i32
    %c0_i32_0 = arith.constant 0 : i32
    %c0_i32_1 = arith.constant 0 : i32
    return %c0_i32, %c0_i32_0 : i32, i32
  }
  func.func @transform_5(%arg0: i32) -> (i32, i32) {
    %c0_i32 = arith.constant 0 : i32
    %c0_i32_0 = arith.constant 0 : i32
    %c0_i32_1 = arith.constant 0 : i32
    return %c0_i32, %c0_i32_0 : i32, i32
  }
  func.func @transform_6(%arg0: i32) -> (i32, i32) {
    %c0_i32 = arith.constant 0 : i32
    %c0_i32_0 = arith.constant 0 : i32
    %c0_i32_1 = arith.constant 0 : i32
    return %c0_i32, %c0_i32_0 : i32, i32
  }
  func.func @transform_7(%arg0: i32) -> (i32, i32) {
    %c0_i32 = arith.constant 0 : i32
    %c0_i32_0 = arith.constant 0 : i32
    %c0_i32_1 = arith.constant 0 : i32
    return %c0_i32, %c0_i32_0 : i32, i32
  }
  func.func @transform_8(%arg0: i32) -> (i32, i32) {
    %c0_i32 = arith.constant 0 : i32
    %c0_i32_0 = arith.constant 0 : i32
    %c0_i32_1 = arith.constant 0 : i32
    return %c0_i32, %c0_i32_0 : i32, i32
  }
  func.func @transform_9(%arg0: i32) -> (i32, i32) {
    %c0_i32 = arith.constant 0 : i32
    %c0_i32_0 = arith.constant 0 : i32
    return %arg0, %c0_i32 : i32, i32
  }
}

module attributes {stable_mosaic.version = 11 : i64} {
  func.func @_gat_kernel(%arg0: i32, %arg1: memref<64x32xbf16, #tpu.memory_space<vmem>>, %arg2: memref<64x512xbf16, #tpu.memory_space<vmem>>, %arg3: memref<64x16xf32, #tpu.memory_space<vmem>>, %arg4: memref<32x1xbf16, #tpu.memory_space<vmem>>, %arg5: memref<512x16xbf16, #tpu.memory_space<vmem>>, %arg6: memref<16x512xbf16, #tpu.memory_space<vmem>>, %arg7: memref<512x32xbf16, #tpu.memory_space<vmem>>, %arg8: memref<32x32xbf16, #tpu.memory_space<vmem>>, %arg9: memref<1x32xf32, #tpu.memory_space<vmem>>, %arg10: memref<64x32xf32, #tpu.memory_space<vmem>>) attributes {dimension_semantics = [#tpu.dimension_semantics<parallel>], iteration_bounds = array<i64: 4>, scalar_prefetch = 0 : i64, scratch_operands = 0 : i64, tpu.core_type = #tpu.core_type<tc>, window_params = [{transform_indices = @transform_0, window_bounds = array<i64: 64, 32>}, {transform_indices = @transform_1, window_bounds = array<i64: 64, 512>}, {transform_indices = @transform_2, window_bounds = array<i64: 64, 16>}, {pipeline_mode = #tpu.pipeline_mode<synchronous>, transform_indices = @transform_3, window_bounds = array<i64: 32, 1>}, {pipeline_mode = #tpu.pipeline_mode<synchronous>, transform_indices = @transform_4, window_bounds = array<i64: 512, 16>}, {pipeline_mode = #tpu.pipeline_mode<synchronous>, transform_indices = @transform_5, window_bounds = array<i64: 16, 512>}, {pipeline_mode = #tpu.pipeline_mode<synchronous>, transform_indices = @transform_6, window_bounds = array<i64: 512, 32>}, {pipeline_mode = #tpu.pipeline_mode<synchronous>, transform_indices = @transform_7, window_bounds = array<i64: 32, 32>}, {pipeline_mode = #tpu.pipeline_mode<synchronous>, transform_indices = @transform_8, window_bounds = array<i64: 1, 32>}, {transform_indices = @transform_9, window_bounds = array<i64: 64, 32>}]} {
    %c0 = arith.constant 0 : index
    %c0_0 = arith.constant 0 : index
    %0 = vector.load %arg1[%c0, %c0_0] : memref<64x32xbf16, #tpu.memory_space<vmem>>, vector<64x32xbf16>
    %c0_1 = arith.constant 0 : index
    %c0_2 = arith.constant 0 : index
    %1 = vector.load %arg2[%c0_1, %c0_2] : memref<64x512xbf16, #tpu.memory_space<vmem>>, vector<64x512xbf16>
    %c0_3 = arith.constant 0 : index
    %c0_4 = arith.constant 0 : index
    %2 = vector.load %arg3[%c0_3, %c0_4] : memref<64x16xf32, #tpu.memory_space<vmem>>, vector<64x16xf32>
    %c0_5 = arith.constant 0 : index
    %c0_6 = arith.constant 0 : index
    %3 = vector.load %arg4[%c0_5, %c0_6] : memref<32x1xbf16, #tpu.memory_space<vmem>>, vector<32x1xbf16>
    %cst = arith.constant dense<0.000000e+00> : vector<64x1xf32>
    %4 = tpu.matmul %0, %3, %cst {dimension_numbers = #tpu.dot_dimension_numbers<[1], [0], [0], [1], [0, 0, 1, 1], [], []>} : vector<64x32xbf16>, vector<32x1xbf16>, vector<64x1xf32> -> vector<64x1xf32>
    %c0_7 = arith.constant 0 : index
    %c0_8 = arith.constant 0 : index
    %5 = vector.load %arg5[%c0_7, %c0_8] : memref<512x16xbf16, #tpu.memory_space<vmem>>, vector<512x16xbf16>
    %cst_9 = arith.constant dense<0.000000e+00> : vector<64x16xf32>
    %6 = tpu.matmul %1, %5, %cst_9 {dimension_numbers = #tpu.dot_dimension_numbers<[1], [0], [0], [1], [0, 0, 1, 1], [], []>} : vector<64x512xbf16>, vector<512x16xbf16>, vector<64x16xf32> -> vector<64x16xf32>
    %7 = vector.broadcast %4 : vector<64x1xf32> to vector<64x16xf32>
    %8 = arith.addf %6, %7 : vector<64x16xf32>
    %cst_10 = arith.constant 0.000000e+00 : f32
    %9 = vector.broadcast %cst_10 : f32 to vector<64x16xf32>
    %10 = arith.cmpf ogt, %8, %9 : vector<64x16xf32>
    %cst_11 = arith.constant 2.000000e-01 : f32
    %11 = vector.broadcast %cst_11 : f32 to vector<64x16xf32>
    %12 = arith.mulf %11, %8 : vector<64x16xf32>
    %13 = arith.select %10, %8, %12 : vector<64x16xi1>, vector<64x16xf32>
    %14 = arith.addf %13, %2 : vector<64x16xf32>
    %cst_12 = arith.constant dense<0xFF800000> : vector<64xf32>
    %15 = vector.multi_reduction <maximumf>, %14, %cst_12 [1] : vector<64x16xf32> to vector<64xf32>
    %16 = vector.shape_cast %15 : vector<64xf32> to vector<64x1xf32>
    %17 = vector.broadcast %16 : vector<64x1xf32> to vector<64x16xf32>
    %18 = arith.subf %14, %17 : vector<64x16xf32>
    %19 = math.exp %18 : vector<64x16xf32>
    %cst_13 = arith.constant dense<0.000000e+00> : vector<64xf32>
    %20 = vector.multi_reduction <add>, %19, %cst_13 [1] : vector<64x16xf32> to vector<64xf32>
    %21 = vector.shape_cast %20 : vector<64xf32> to vector<64x1xf32>
    %22 = tpu.reciprocal %21 {approx = true} : vector<64x1xf32> -> vector<64x1xf32>
    %23 = arith.mulf %21, %22 : vector<64x1xf32>
    %cst_14 = arith.constant 2.000000e+00 : f32
    %24 = vector.broadcast %cst_14 : f32 to vector<64x1xf32>
    %25 = arith.subf %24, %23 : vector<64x1xf32>
    %26 = arith.mulf %22, %25 : vector<64x1xf32>
    %27 = vector.broadcast %26 : vector<64x1xf32> to vector<64x16xf32>
    %28 = arith.mulf %19, %27 : vector<64x16xf32>
    %29 = arith.truncf %28 : vector<64x16xf32> to vector<64x16xbf16>
    %c0_15 = arith.constant 0 : index
    %c0_16 = arith.constant 0 : index
    %30 = vector.load %arg6[%c0_15, %c0_16] : memref<16x512xbf16, #tpu.memory_space<vmem>>, vector<16x512xbf16>
    %cst_17 = arith.constant dense<0.000000e+00> : vector<64x512xf32>
    %31 = tpu.matmul %29, %30, %cst_17 {dimension_numbers = #tpu.dot_dimension_numbers<[1], [0], [0], [1], [0, 0, 1, 1], [], []>} : vector<64x16xbf16>, vector<16x512xbf16>, vector<64x512xf32> -> vector<64x512xf32>
    %32 = arith.extf %1 : vector<64x512xbf16> to vector<64x512xf32>
    %33 = arith.mulf %32, %31 : vector<64x512xf32>
    %34 = arith.truncf %33 : vector<64x512xf32> to vector<64x512xbf16>
    %c0_18 = arith.constant 0 : index
    %c0_19 = arith.constant 0 : index
    %35 = vector.load %arg7[%c0_18, %c0_19] : memref<512x32xbf16, #tpu.memory_space<vmem>>, vector<512x32xbf16>
    %cst_20 = arith.constant dense<0.000000e+00> : vector<64x32xf32>
    %36 = tpu.matmul %34, %35, %cst_20 {dimension_numbers = #tpu.dot_dimension_numbers<[1], [0], [0], [1], [0, 0, 1, 1], [], []>} : vector<64x512xbf16>, vector<512x32xbf16>, vector<64x32xf32> -> vector<64x32xf32>
    %37 = arith.extf %0 : vector<64x32xbf16> to vector<64x32xf32>
    %38 = arith.addf %36, %37 : vector<64x32xf32>
    %cst_21 = arith.constant 0.000000e+00 : f32
    %39 = vector.broadcast %cst_21 : f32 to vector<64x32xf32>
    %40 = arith.cmpf ogt, %38, %39 : vector<64x32xf32>
    %cst_22 = arith.constant 0.000000e+00 : f32
    %41 = vector.broadcast %cst_22 : f32 to vector<64x32xf32>
    %42 = arith.minimumf %38, %41 : vector<64x32xf32>
    %43 = math.exp %42 : vector<64x32xf32>
    %cst_23 = arith.constant 1.000000e+00 : f32
    %44 = vector.broadcast %cst_23 : f32 to vector<64x32xf32>
    %45 = arith.subf %43, %44 : vector<64x32xf32>
    %46 = arith.select %40, %38, %45 : vector<64x32xi1>, vector<64x32xf32>
    %47 = arith.truncf %46 : vector<64x32xf32> to vector<64x32xbf16>
    %c0_24 = arith.constant 0 : index
    %c0_25 = arith.constant 0 : index
    %48 = vector.load %arg8[%c0_24, %c0_25] : memref<32x32xbf16, #tpu.memory_space<vmem>>, vector<32x32xbf16>
    %cst_26 = arith.constant dense<0.000000e+00> : vector<64x32xf32>
    %49 = tpu.matmul %47, %48, %cst_26 {dimension_numbers = #tpu.dot_dimension_numbers<[1], [0], [0], [1], [0, 0, 1, 1], [], []>} : vector<64x32xbf16>, vector<32x32xbf16>, vector<64x32xf32> -> vector<64x32xf32>
    %c0_27 = arith.constant 0 : index
    %c0_28 = arith.constant 0 : index
    %50 = vector.load %arg9[%c0_27, %c0_28] : memref<1x32xf32, #tpu.memory_space<vmem>>, vector<1x32xf32>
    %51 = vector.broadcast %50 : vector<1x32xf32> to vector<64x32xf32>
    %52 = arith.addf %49, %51 : vector<64x32xf32>
    %c0_29 = arith.constant 0 : index
    %c0_30 = arith.constant 0 : index
    %53 = vector.load %arg10[%c0_29, %c0_30] : memref<64x32xf32, #tpu.memory_space<vmem>>, vector<64x32xf32>
    tpu.vector_store %arg10[%c0_29, %c0_30], %52 {strides = array<i32>} : memref<64x32xf32, #tpu.memory_space<vmem>>, vector<64x32xf32>,
    return
  }
  func.func @transform_0(%arg0: i32) -> (i32, i32) {
    %c0_i32 = arith.constant 0 : i32
    %c0_i32_0 = arith.constant 0 : i32
    return %arg0, %c0_i32 : i32, i32
  }
  func.func @transform_1(%arg0: i32) -> (i32, i32) {
    %c0_i32 = arith.constant 0 : i32
    %c0_i32_0 = arith.constant 0 : i32
    return %arg0, %c0_i32 : i32, i32
  }
  func.func @transform_2(%arg0: i32) -> (i32, i32) {
    %c0_i32 = arith.constant 0 : i32
    %c0_i32_0 = arith.constant 0 : i32
    return %arg0, %c0_i32 : i32, i32
  }
  func.func @transform_3(%arg0: i32) -> (i32, i32) {
    %c0_i32 = arith.constant 0 : i32
    %c0_i32_0 = arith.constant 0 : i32
    %c0_i32_1 = arith.constant 0 : i32
    return %c0_i32, %c0_i32_0 : i32, i32
  }
  func.func @transform_4(%arg0: i32) -> (i32, i32) {
    %c0_i32 = arith.constant 0 : i32
    %c0_i32_0 = arith.constant 0 : i32
    %c0_i32_1 = arith.constant 0 : i32
    return %c0_i32, %c0_i32_0 : i32, i32
  }
  func.func @transform_5(%arg0: i32) -> (i32, i32) {
    %c0_i32 = arith.constant 0 : i32
    %c0_i32_0 = arith.constant 0 : i32
    %c0_i32_1 = arith.constant 0 : i32
    return %c0_i32, %c0_i32_0 : i32, i32
  }
  func.func @transform_6(%arg0: i32) -> (i32, i32) {
    %c0_i32 = arith.constant 0 : i32
    %c0_i32_0 = arith.constant 0 : i32
    %c0_i32_1 = arith.constant 0 : i32
    return %c0_i32, %c0_i32_0 : i32, i32
  }
  func.func @transform_7(%arg0: i32) -> (i32, i32) {
    %c0_i32 = arith.constant 0 : i32
    %c0_i32_0 = arith.constant 0 : i32
    %c0_i32_1 = arith.constant 0 : i32
    return %c0_i32, %c0_i32_0 : i32, i32
  }
  func.func @transform_8(%arg0: i32) -> (i32, i32) {
    %c0_i32 = arith.constant 0 : i32
    %c0_i32_0 = arith.constant 0 : i32
    %c0_i32_1 = arith.constant 0 : i32
    return %c0_i32, %c0_i32_0 : i32, i32
  }
  func.func @transform_9(%arg0: i32) -> (i32, i32) {
    %c0_i32 = arith.constant 0 : i32
    %c0_i32_0 = arith.constant 0 : i32
    return %arg0, %c0_i32 : i32, i32
  }
}

</mosaic_0001>

<bundles_post_ra>
// kernel: _gat_forward_impl.1
= control target key start
LH: loop header
LB: loop body
LE: loop exit
PB: predicated region body
PF: predicated region fallthrough
CT: control target
= control target key end

     0   :  { %s2637_s30 = smov 0   ;;  %s3108_s0 = inlined_call_operand.vmem [shape: bf16[256,32], index: 0, kind: input, shape index: {}]   ;;  %s3109_s1 = inlined_call_operand.vmem [shape: bf16[256,512], index: 1, kind: input, shape index: {}]   ;;  %s3110_s2 = inlined_call_operand.vmem [shape: f32[256,16], index: 2, kind: input, shape index: {}]   ;;  %s3111_s3 = inlined_call_operand.vmem [shape: bf16[32,1], index: 3, kind: input, shape index: {}]   ;;  %s3112_s4 = inlined_call_operand.vmem [shape: bf16[512,16], index: 4, kind: input, shape index: {}]   ;;  %s3113_s5 = inlined_call_operand.vmem [shape: bf16[16,512], index: 5, kind: input, shape index: {}]   ;;  %s3114_s6 = inlined_call_operand.vmem [shape: bf16[512,32], index: 6, kind: input, shape index: {}]   ;;  %s3115_s7 = inlined_call_operand.vmem [shape: bf16[32,32], index: 7, kind: input, shape index: {}]   ;;  %s3116_s8 = inlined_call_operand.vmem [shape: f32[1,32], index: 8, kind: input, shape index: {}]   ;;  %s3117_s9 = inlined_call_operand.vmem [shape: f32[256,32], index: 9, kind: output, shape index: {}]  }
   0x1 LB: > { %s2081_s10 = sadd.s32 4294967295, %s2584_s30   ;;  %p2085_p0 = scmp.ge.s32.totalorder %s2584_s30, 1  ;;  %s2584_s30 = sphi %s2637_s30, %s19_s30  }
   0x2   : > { %p311_p1 = scmp.lt.s32.totalorder %s2584_s30, 5 }
   0x4   : > { %p312_p2 = pnand %p2085_p0, %p311_p1 }
   0x5   : > { %v2422_v0 = vld [vmem:[%s3111_s3] sm:$0xff] (!%p312_p2)   ;;  %s2086_s13 = sshll.u32 (!%p312_p2), %s2081_s10, 3  ;;  %v2423_v1 = vld [vmem:[%s3111_s3 + $0x8] sm:$0xff] (!%p312_p2)   ;;  %v2586_v5 = vmov (!%p312_p2), 0   ;;  %vm452_vm0 = vcmask (!%p312_p2), 261120   ;;  %v2436_v15 = vld [vmem:[%s3112_s4 + $0x50] sm:$0xff] (!%p312_p2)  }
   0x6   : > { %315 = sbr.rel (%p312_p2) target bundleno = 1397 (0x575), region = 56  ;;  %p359_p3 = scmp.lt.s32.totalorder (!%p312_p2), %s2086_s13, 31  ;;  %2387 = vmatprep.subr.bf16.mxu0 (!%p312_p2), %v2422_v0  ;;  %v2428_v2 = vld [vmem:[%s3112_s4 + $0x40] sm:$0xff] (!%p312_p2)   ;;  %2421 = vset.pattern.permute.xlu1 (!%p312_p2), %v2586_v5  ;;  %v2432_v10 = vld [vmem:[%s3112_s4 + $0x48] sm:$0xff] (!%p312_p2)   ;;  %v2437_v16 = vld [vmem:[%s3112_s4 + $0x10] sm:$0xff] (!%p312_p2)   ;;  %vm1068_vm3 = vcmask (!%p312_p2), 130048  }
   0x7   : > { %2388 = vmatpush3.bf16.msra.mxu0 (!%p312_p2), %v2422_v0  ;;  %v2429_v3 = vld [vmem:[%s3112_s4] sm:$0xff] (!%p312_p2)   ;;  %2221 = vmatprep.subr.bf16.mxu1 (!%p312_p2), %v2428_v2  ;;  %v2433_v11 = vld [vmem:[%s3112_s4 + $0x8] sm:$0xff] (!%p312_p2)   ;;  %v2438_v17 = vld [vmem:[%s3112_s4 + $0xd0] sm:$0xff] (!%p312_p2)  }
   0x8   : > { %2389 = vmatprep.subr.bf16.mxu0 (!%p312_p2), %v2423_v1  ;;  %v2430_v4 = vld [vmem:[%s3112_s4 + $0xc0] sm:$0xff] (!%p312_p2)   ;;  %2222 = vmatpush3.bf16.msra.mxu1 (!%p312_p2), %v2429_v3  ;;  %v2434_v13 = vld [vmem:[%s3112_s4 + $0xc8] sm:$0xff] (!%p312_p2)   ;;  %v2439_v18 = vld [vmem:[%s3112_s4 + $0x90] sm:$0xff] (!%p312_p2)  }
   0x9   : > { %2420 = vset.pattern.permute.xlu0 (!%p312_p2), %v2586_v5  ;;  %v2431_v9 = vld [vmem:[%s3112_s4 + $0x80] sm:$0xff] (!%p312_p2)   ;;  %2223 = vmatprep.subr.bf16.mxu1 (!%p312_p2), %v2432_v10  ;;  %v2435_v14 = vld [vmem:[%s3112_s4 + $0x88] sm:$0xff] (!%p312_p2)   ;;  %v2440_v19 = vld [vmem:[%s3112_s4 + $0x58] sm:$0xff] (!%p312_p2)  }
   0xa   : > { %v2441_v20 = vld [vmem:[%s3112_s4 + $0x18] sm:$0xff] (!%p312_p2)   ;;  %v2444_v23 = vld [vmem:[%s3112_s4 + $0x60] sm:$0xff] (!%p312_p2)   ;;  %v2448_v27 = vld [vmem:[%s3112_s4 + $0x68] sm:$0xff] (!%p312_p2)  }
   0xb   : > { %2390 = vmatpush3.bf16.msra.mxu0 (!%p312_p2), %v2423_v1  ;;  %v2442_v21 = vld [vmem:[%s3112_s4 + $0xd8] sm:$0xff] (!%p312_p2)   ;;  %v2445_v24 = vld [vmem:[%s3112_s4 + $0x20] sm:$0xff] (!%p312_p2)   ;;  %v2449_v28 = vld [vmem:[%s3112_s4 + $0x28] sm:$0xff] (!%p312_p2)  }
   0xc   : > { %2261 = vmatprep.subr.bf16.mxu0 (!%p312_p2), %v2430_v4  ;;  %2224 = vmatpush3.bf16.msra.mxu1 (!%p312_p2), %v2433_v11  ;;  %v2443_v22 = vld [vmem:[%s3112_s4 + $0x98] sm:$0xff] (!%p312_p2)   ;;  %v2446_v25 = vld [vmem:[%s3112_s4 + $0xe0] sm:$0xff] (!%p312_p2)   ;;  %v2450_v29 = vld [vmem:[%s3112_s4 + $0xe8] sm:$0xff] (!%p312_p2)  }
   0xd   : > { %s3119_s13 = smov (!%p359_p3, %s2086_s13), 31  ;;  %2225 = vmatprep.subr.bf16.mxu1 %v2436_v15  ;;  %v2447_v26 = vld [vmem:[%s3112_s4 + $0xa0] sm:$0xff]   ;;  %v2451_v30 = vld [vmem:[%s3112_s4 + $0xa8] sm:$0xff]   ;;  %v2452_v31 = vld [vmem:[%s3112_s4 + $0x70] sm:$0xff]  }
   0xe   : > { %s2087_s22 = sshll.u32 %s3119_s13, 2  ;;  %s2214_s12 = sshll.u32 %s3119_s13, 4  ;;  %v2453_v32 = vld [vmem:[%s3112_s4 + $0x30] sm:$0xff]   ;;  %v2456_v35 = vld [vmem:[%s3112_s4 + $0x78] sm:$0xff]  }
   0xf   : > { %s2667_s25 = scalar_lea.vmem %s3108_s0, %s2087_s22  ;;  %v2454_v33 = vld [vmem:[%s3112_s4 + $0xf0] sm:$0xff]   ;;  %s2754_s22 = scalar_lea.vmem %s3109_s1, %s2214_s12  ;;  %v2457_v36 = vld [vmem:[%s3112_s4 + $0x38] sm:$0xff]  }
  0x10   : > { %v384_v6 = vld [vmem:[%s2667_s25] sm:$0xff]   ;;  %v386_v7 = vld [vmem:[%s2667_s25 + $0x8] sm:$0xff]   ;;  %v388_v8 = vld [vmem:[%s2667_s25 + $0x10] sm:$0xff]   ;;  %2226 = vmatpush3.bf16.msra.mxu1 %v2437_v16  ;;  %s2092_s15 = sshll.u32 %s3119_s13, 3 }
  0x11   : > { %2391 = vmatprep.mubr.msk.bf16.mxu0 %vm452_vm0, %v384_v6  ;;  %v390_v12 = vld [vmem:[%s2667_s25 + $0x18] sm:$0xff]   ;;  %2227 = vmatprep.subr.bf16.mxu1 %v2440_v19  ;;  %v2455_v34 = vld [vmem:[%s3112_s4 + $0xb0] sm:$0xff]   ;;  %v2769_v38 = vld [vmem:[%s2754_s22] sm:$0xff]  ;;  %s2843_s18 = scalar_lea.vmem %s3110_s2, %s2092_s15  ;;  %s381_s17 = scalar_lea.vmem %s3117_s9, %s2092_s15 }
  0x12   : > { %2392 = vmatmul.mubr.msk.bf16.vlgmr.msra.gmra.mrb[0].mxu0 %vm452_vm0, %v386_v7  ;;  %v2458_v37 = vld [vmem:[%s3112_s4 + $0xf8] sm:$0xff]   ;;  %v2772_v39 = vld [vmem:[%s2754_s22 + $0x10] sm:$0xff]  ;;  %v2782_v43 = vld [vmem:[%s2754_s22 + $0x8] sm:$0xff] }
  0x13   : > { %2395 = vmatprep.mubr.msk.bf16.mxu0 %vm452_vm0, %v388_v8  ;;  %2262 = vmatpush3.bf16.msra.mxu0 %v2431_v9  ;;  %v2106_v40 = vcombine.high %v2769_v38, %v2772_v39  ;;  %v2460_v41 = vld [vmem:[%s3112_s4 + $0xb8] sm:$0xff]   ;;  %v2105_v42 = vcombine.low %v2769_v38, %v2772_v39  ;;  %v2790_v46 = vld [vmem:[%s2754_s22 + $0x20] sm:$0xff]  ;;  %v2793_v47 = vld [vmem:[%s2754_s22 + $0x30] sm:$0xff] }
  0x14   : > { %2263 = vmatprep.subr.bf16.mxu0 %v2434_v13  ;;  %2228 = vmatpush3.bf16.msra.mxu1 %v2441_v20  ;;  %v2785_v44 = vld [vmem:[%s2754_s22 + $0x18] sm:$0xff]  ;;  %v2796_v48 = vld [vmem:[%s2754_s22 + $0x28] sm:$0xff]  ;;  %v2110_v49 = vcombine.high %v2790_v46, %v2793_v47  ;;  %v400_v53 = vld [vmem:[%s2754_s22 + $0x40] sm:$0xff]  ;;  %v2109_v55 = vcombine.low %v2790_v46, %v2793_v47 }
  0x15   : > { %2229 = vmatprep.subr.bf16.mxu1 %v2444_v23  ;;  %v2108_v45 = vcombine.high %v2782_v43, %v2785_v44  ;;  %938 = vmatprep.mubr.bf16.mxu1 %v2106_v40  ;;  %v2801_v50 = vld [vmem:[%s2754_s22 + $0x38] sm:$0xff]  ;;  %v2107_v51 = vcombine.low %v2782_v43, %v2785_v44  ;;  %v402_v54 = vld [vmem:[%s2754_s22 + $0x50] sm:$0xff]  ;;  %v2812_v56 = vld [vmem:[%s2754_s22 + $0x48] sm:$0xff] }
  0x16   : > { %v2112_v52 = vcombine.high %v2796_v48, %v2801_v50  ;;  %v2815_v57 = vld [vmem:[%s2754_s22 + $0x58] sm:$0xff]  ;;  %v2114_v58 = vcombine.high %v400_v53, %v402_v54  ;;  %v2111_v59 = vcombine.low %v2796_v48, %v2801_v50  ;;  %v404_v60 = vld [vmem:[%s2754_s22 + $0x60] sm:$0xff]  ;;  %v406_v61 = vld [vmem:[%s2754_s22 + $0x70] sm:$0xff]  ;;  %v2113_v63 = vcombine.low %v400_v53, %v402_v54 }
  0x17   : > { %2264 = vmatpush3.bf16.msra.mxu0 %v2435_v14  ;;  %v2116_v62 = vcombine.high %v2812_v56, %v2815_v57  ;;  %v2824_v0 = vld [vmem:[%s2754_s22 + $0x68] sm:$0xff]  ;;  %v2827_v1 = vld [vmem:[%s2754_s22 + $0x78] sm:$0xff]  ;;  %v2118_v2 = vcombine.high %v404_v60, %v406_v61  ;;  %v2115_v3 = vcombine.low %v2812_v56, %v2815_v57  ;;  %v2117_v6 = vcombine.low %v404_v60, %v406_v61 }
  0x18   : > { %2265 = vmatprep.subr.bf16.mxu0 %v2438_v17  ;;  %2230 = vmatpush3.bf16.msra.mxu1 %v2445_v24  ;;  %v2120_v4 = vcombine.high %v2824_v0, %v2827_v1  ;;  %v2119_v7 = vcombine.low %v2824_v0, %v2827_v1 }
  0x19   : > { %2231 = vmatprep.subr.bf16.mxu1 %v2448_v27 }
  0x1a   : > { %2396 = vmatmul.mubr.msk.bf16.gmra.mrb[4].mxu0 %vm452_vm0, %v390_v12 }
  0x1b   : > { %2266 = vmatpush3.bf16.msra.mxu0 %v2439_v18  ;;  %1003 = vmatprep.mubr.bf16.mxu0 %v2108_v45 }
  0x1c   : > { %2267 = vmatprep.subr.bf16.mxu0 %v2442_v21  ;;  %2232 = vmatpush3.bf16.msra.mxu1 %v2449_v28 }
  0x1d   : > { %2233 = vmatprep.subr.bf16.mxu1 %v2452_v31 }
  0x1f   : > { %2268 = vmatpush3.bf16.msra.mxu0 %v2443_v22 }
  0x20   : > { %2269 = vmatprep.subr.bf16.mxu0 %v2446_v25  ;;  %2234 = vmatpush3.bf16.msra.mxu1 %v2453_v32 }
  0x21   : > { %2235 = vmatprep.subr.bf16.mxu1 %v2456_v35 }
  0x23   : > { %2270 = vmatpush3.bf16.msra.mxu0 %v2447_v26 }
  0x24   : > { %2271 = vmatprep.subr.bf16.mxu0 %v2450_v29  ;;  %2236 = vmatpush3.bf16.msra.mxu1 %v2457_v36 }
  0x27   : > { %2272 = vmatpush3.bf16.msra.mxu0 %v2451_v30  ;;  %939 = vmatmul.mubr.bf16.vlgmr.msra.gmra.mrb[0].mxu1 %v2105_v42 }
  0x28   : > { %2273 = vmatprep.subr.bf16.mxu0 %v2454_v33  ;;  %946 = vmatprep.mubr.bf16.mxu1 %v2110_v49 }
  0x2b   : > { %2274 = vmatpush3.bf16.msra.mxu0 %v2455_v34 }
  0x2c   : > { %2275 = vmatprep.subr.bf16.mxu0 %v2458_v37 }
  0x2f   : > { %2276 = vmatpush3.bf16.msra.mxu0 %v2460_v41  ;;  %947 = vmatmul.mubr.bf16.gmra.mrb[4].mxu1 %v2109_v55 }
  0x30   : > { %954 = vmatprep.mubr.bf16.mxu1 %v2114_v58 }
  0x32   : > { %1004 = vmatmul.mubr.bf16.vlgmr.msra.gmra.mrb[8].mxu0 %v2107_v51 }
  0x33   : > { %1011 = vmatprep.mubr.bf16.mxu0 %v2112_v52 }
  0x37   : > { %955 = vmatmul.mubr.bf16.gmra.mrb[8].mxu1 %v2113_v63 }
  0x38   : > { %962 = vmatprep.mubr.bf16.mxu1 %v2118_v2 }
  0x3a   : > { %1012 = vmatmul.mubr.bf16.gmra.mrb[12].mxu0 %v2111_v59 }
  0x3b   : > { %1019 = vmatprep.mubr.bf16.mxu0 %v2116_v62 }
  0x3f   : > { %963 = vmatmul.mubr.bf16.gmra.mrb[12].mxu1 %v2117_v6 }
  0x40   : > { %1253 = vmatprep.mubr.bf16.mxu1 %v2586_v5 }
  0x42   : > { %1020 = vmatmul.mubr.bf16.gmra.mrb[16].mxu0 %v2115_v3 }
  0x43   : > { %1027 = vmatprep.mubr.bf16.mxu0 %v2120_v4 }
  0x4a   : > { %1028 = vmatmul.mubr.bf16.gmra.mrb[20].mxu0 %v2119_v7 }
  0x4b   : > { %1326 = vmatprep.mubr.bf16.mxu0 %v2586_v5 }
  0xe5   : > { %v2393_v8 = vpop.f32.mrb[0].mxu0 }
  0xe6   : > { %606 = vperm.xlu1 %2421, %v2393_v8   ;;  %v499_v9 = vpop.f32.mrb[1].mxu0 }
  0xe7   : > { %596 = vperm.xlu0 %2420, %v499_v9   ;;  %v2394_v10 = vpop.f32.mrb[2].mxu0 }
  0xe8   : > { %v502_v11 = vpop.f32.mrb[3].mxu0 }
  0xea   : > { %611 = vperm.xlu1 %2421, %v2394_v10  }
  0xeb   : > { %601 = vperm.xlu0 %2420, %v502_v11  }
  0xed   : > { %v2397_v12 = vpop.f32.mrb[4].mxu0 }
  0xee   : > { %v515_v13 = vpop.f32.mrb[5].mxu0 }
  0xef   : > { %616 = vperm.xlu0 %2420, %v515_v13   ;;  %v2398_v14 = vpop.f32.mrb[6].mxu0 }
  0xf0   : > { %v518_v15 = vpop.f32.mrb[7].mxu0 }
  0xf1   : > { %621 = vperm.xlu1 %2421, %v518_v15  }
  0xf3   : > { %626 = vperm.xlu0 %2420, %v2397_v12  }
  0xf5   : > { %631 = vperm.xlu1 %2421, %v2398_v14  }
  0xfa   : > { %v2237_v16 = vpop.f32.mrb[0].mxu1 }
  0xfb   : > { %v2238_v17 = vpop.f32.mrb[1].mxu1 }
  0xfc   : > { %v2239_v18 = vadd.f32 %v2238_v17, %v2237_v16  ;;  %v2240_v19 = vpop.f32.mrb[2].mxu1 }
  0xfd   : > { %v2241_v20 = vpop.f32.mrb[3].mxu1 }
  0xfe   : > { %v2242_v22 = vadd.f32 %v2241_v20, %v2240_v19 }
 0x102   : > { %v2243_v27 = vpop.f32.mrb[4].mxu1 }
 0x103   : > { %v2244_v29 = vpop.f32.mrb[5].mxu1 }
 0x104   : > { %v2245_v30 = vadd.f32 %v2244_v29, %v2243_v27  ;;  %v2246_v31 = vpop.f32.mrb[6].mxu1  ;;  %v408_v29 = vld [vmem:[%s2843_s18] sm:$0xff] }
 0x105   : > { %v2277_v21 = vpop.f32.mrb[8].mxu0  ;;  %v2247_v32 = vpop.f32.mrb[7].mxu1 }
 0x106   : > { %v2278_v23 = vpop.f32.mrb[9].mxu0  ;;  %v2248_v34 = vadd.f32 %v2247_v32, %v2246_v31  ;;  %v410_v32 = vld [vmem:[%s2843_s18 + $0x10] sm:$0xff] }
 0x107   : > { %v2279_v24 = vadd.f32 %v2278_v23, %v2277_v21  ;;  %v2280_v25 = vpop.f32.mrb[10].mxu0 }
 0x108   : > { %v2281_v26 = vpop.f32.mrb[11].mxu0 }
 0x109   : > { %v2282_v28 = vadd.f32 %v2281_v26, %v2280_v25 }
 0x10a   : > { %v2249_v42 = vpop.f32.mrb[8].mxu1 }
 0x10b   : > { %v2250_v45 = vpop.f32.mrb[9].mxu1 }
 0x10c   : > { %v2251_v49 = vadd.f32 %v2250_v45, %v2249_v42  ;;  %v2252_v51 = vpop.f32.mrb[10].mxu1 }
 0x10d   : > { %v2283_v33 = vpop.f32.mrb[12].mxu0  ;;  %v2253_v52 = vpop.f32.mrb[11].mxu1 }
 0x10e   : > { %v2284_v35 = vpop.f32.mrb[13].mxu0  ;;  %v2254_v54 = vadd.f32 %v2253_v52, %v2252_v51  ;;  %v411_v52 = vld [vmem:[%s2843_s18 + $0x18] sm:$0xff] }
 0x10f   : > { %v2285_v36 = vadd.f32 %v2284_v35, %v2283_v33  ;;  %v2286_v37 = vpop.f32.mrb[14].mxu0 }
 0x110   : > { %v2287_v40 = vpop.f32.mrb[15].mxu0 }
 0x111   : > { %v2288_v41 = vadd.f32 %v2287_v40, %v2286_v37  ;;  %v409_v40 = vld [vmem:[%s2843_s18 + $0x8] sm:$0xff] }
 0x112   : > { %v2255_v61 = vpop.f32.mrb[12].mxu1 }
 0x113   : > { %v2256_v63 = vpop.f32.mrb[13].mxu1 }
 0x114   : > { %v2257_v2 = vadd.f32 %v2256_v63, %v2255_v61  ;;  %v2258_v3 = vpop.f32.mrb[14].mxu1  ;;  %v412_v63 = vld [vmem:[%s2843_s18 + $0x20] sm:$0xff] }
 0x115   : > { %v2289_v53 = vpop.f32.mrb[16].mxu0  ;;  %v2259_v4 = vpop.f32.mrb[15].mxu1 }
 0x116   : > { %v2290_v55 = vpop.f32.mrb[17].mxu0  ;;  %v2260_v7 = vadd.f32 %v2259_v4, %v2258_v3 }
 0x117   : > { %v2291_v58 = vadd.f32 %v2290_v55, %v2289_v53  ;;  %v2292_v59 = vpop.f32.mrb[18].mxu0 }
 0x118   : > { %v2293_v60 = vpop.f32.mrb[19].mxu0 }
 0x119   : > { %v2294_v62 = vadd.f32 %v2293_v60, %v2292_v59 }
 0x11d   : > { %v2295_v6 = vpop.f32.mrb[20].mxu0 }
 0x11e   : > { %v2296_v8 = vpop.f32.mrb[21].mxu0 }
 0x11f   : > { %v2297_v9 = vadd.f32 %v2296_v8, %v2295_v6  ;;  %v2298_v10 = vpop.f32.mrb[22].mxu0 }
 0x120   : > { %v2299_v11 = vpop.f32.mrb[23].mxu0 }
 0x121   : > { %v2300_v12 = vadd.f32 %v2299_v11, %v2298_v10 }
 0x165   : > { %v607_v13 = vpop.permute.xlu1 %606 }
 0x166   : > { %v949_v14 = vadd.f32 %v2245_v30, %v607_v13  ;;  %v597_v15 = vpop.permute.xlu0 %596  ;;  %v413_v13 = vld [vmem:[%s2843_s18 + $0x28] sm:$0xff] }
 0x167   : > { %v941_v16 = vadd.f32 %v2239_v18, %v597_v15  ;;  %v414_v15 = vld [vmem:[%s2843_s18 + $0x30] sm:$0xff] }
 0x168   : > { %v1014_v17 = vadd.f32 %v2285_v36, %v949_v14 }
 0x169   : > { %v1006_v19 = vadd.f32 %v2279_v24, %v941_v16  ;;  %v612_v20 = vpop.permute.xlu1 %611 }
 0x16a   : > { %v1046_v21 = vmul.f32 0.2, %v1014_v17  ;;  %v952_v23 = vadd.f32 %v2248_v34, %v612_v20  ;;  %v602_v25 = vpop.permute.xlu0 %601  ;;  %vm1038_vm1 = vcmp.gt.f32.partialorder %v1014_v17, 0.0 }
 0x16b   : > { %v1044_v26 = vmul.f32 0.2, %v1006_v19  ;;  %v944_v27 = vadd.f32 %v2242_v22, %v602_v25  ;;  %vm1036_vm2 = vcmp.gt.f32.partialorder %v1006_v19, 0.0 }
 0x16c   : > { %v1017_v18 = vadd.f32 %v2288_v41, %v952_v23  ;;  %v1054_v33 = vsel %vm1038_vm1, %v1014_v17, %v1046_v21 }
 0x16d   : > { %v1009_v30 = vadd.f32 %v2282_v28, %v944_v27  ;;  %v1052_v31 = vsel %vm1036_vm2, %v1006_v19, %v1044_v26  ;;  %v2852_v28 = vadd.f32 %v1054_v33, %v410_v32  ;;  %v2481_v32 = vld [vmem:[%s3113_s5 + $0xc] ss:$16 sps:$4 sm:$0xff]  }
 0x16e   : > { %v1047_v35 = vmul.f32 0.2, %v1017_v18  ;;  %v617_v36 = vpop.permute.xlu0 %616  ;;  %v2847_v24 = vadd.f32 %v1052_v31, %v408_v29  ;;  %vm1039_vm4 = vcmp.gt.f32.partialorder %v1017_v18, 0.0  ;;  %v2479_v31 = vld [vmem:[%s3113_s5 + $0x8] ss:$16 sps:$4 sm:$0xff]   ;;  %1294 = vmatprep.subr.bf16.mxu0 %v2481_v32 }
 0x16f   : > { %v1045_v34 = vmul.f32 0.2, %v1009_v30  ;;  %v957_v37 = vadd.f32 %v2251_v49, %v617_v36  ;;  %vm1037_vm5 = vcmp.gt.f32.partialorder %v1009_v30, 0.0  ;;  %1295 = vmatpush1.bf16.msra.mxu0 %v2479_v31 }
 0x170   : > { %v622_v22 = vpop.permute.xlu1 %621  ;;  %v1069_v41 = vsel %vm1068_vm3, %v2847_v24, -inf  ;;  %v1055_v53 = vsel %vm1039_vm4, %v1017_v18, %v1047_v35  ;;  %v2476_v18 = vld [vmem:[%s3113_s5] ss:$16 sps:$4 sm:$0xff]  }
 0x171   : > { %v1022_v42 = vadd.f32 %v2291_v58, %v957_v37  ;;  %v960_v45 = vadd.f32 %v2254_v54, %v622_v22  ;;  %1070 = vmax.xlane.f32.xlu0 %v1069_v41  ;;  %v1053_v51 = vsel %vm1037_vm5, %v1009_v30, %v1045_v34  ;;  %v1075_v58 = vsel %vm1068_vm3, %v2852_v28, -inf  ;;  %v2478_v30 = vld [vmem:[%s3113_s5 + $0x4] ss:$16 sps:$4 sm:$0xff]  }
 0x172   : > { %v627_v55 = vpop.permute.xlu0 %626  ;;  %v1061_v59 = vadd.f32 %v1053_v51, %v409_v40  ;;  %v1063_v54 = vadd.f32 %v1055_v53, %v411_v52  ;;  %1221 = vmatprep.subr.bf16.mxu1 %v2478_v30 }
 0x173   : > { %v1048_v60 = vmul.f32 0.2, %v1022_v42  ;;  %v1025_v49 = vadd.f32 %v2294_v62, %v960_v45  ;;  %v965_v61 = vadd.f32 %v2257_v2, %v627_v55  ;;  %vm1040_vm6 = vcmp.gt.f32.partialorder %v1022_v42, 0.0  ;;  %1222 = vmatpush1.bf16.msra.mxu1 %v2476_v18 }
 0x174   : > { %v632_v3 = vpop.permute.xlu1 %631  ;;  %v1072_v4 = vsel %vm1068_vm3, %v1061_v59, -inf  ;;  %v1078_v19 = vsel %vm1068_vm3, %v1063_v54, -inf }
 0x175   : > { %v1049_v6 = vmul.f32 0.2, %v1025_v49  ;;  %v1030_v8 = vadd.f32 %v2297_v9, %v965_v61  ;;  %v968_v10 = vadd.f32 %v2260_v7, %v632_v3  ;;  %1073 = vmax.xlane.f32.xlu1 %v1072_v4  ;;  %1076 = vmax.xlane.f32.xlu0 %v1075_v58  ;;  %v1056_v11 = vsel %vm1040_vm6, %v1022_v42, %v1048_v60  ;;  %v415_v9 = vld [vmem:[%s2843_s18 + $0x38] sm:$0xff] }
 0x176   : > { %v1064_v62 = vadd.f32 %v1056_v11, %v412_v63  ;;  %vm1041_vm7 = vcmp.gt.f32.partialorder %v1025_v49, 0.0 }
 0x177   : > { %v1050_v2 = vmul.f32 0.2, %v1030_v8  ;;  %v1033_v14 = vadd.f32 %v2300_v12, %v968_v10  ;;  %vm1042_vm8 = vcmp.gt.f32.partialorder %v1030_v8, 0.0  ;;  %v1057_v16 = vsel %vm1041_vm7, %v1025_v49, %v1049_v6 }
 0x178   : > { %v1081_v17 = vsel %vm1068_vm3, %v1064_v62, -inf  ;;  %v1065_v20 = vadd.f32 %v1057_v16, %v413_v13 }
 0x179   : > { %v1051_v21 = vmul.f32 0.2, %v1033_v14  ;;  %1082 = vmax.xlane.f32.xlu1 %v1081_v17  ;;  %1079 = vmax.xlane.f32.xlu0 %v1078_v19  ;;  %v1058_v7 = vsel %vm1042_vm8, %v1030_v8, %v1050_v2  ;;  %vm1043_vm9 = vcmp.gt.f32.partialorder %v1033_v14, 0.0 }
 0x17a   : > { %v1066_v23 = vadd.f32 %v1058_v7, %v414_v15  ;;  %v1084_v12 = vsel %vm1068_vm3, %v1065_v20, -inf }
 0x17b   : > { %v1059_v25 = vsel %vm1043_vm9, %v1033_v14, %v1051_v21 }
 0x17c   : > { %v1087_v26 = vsel %vm1068_vm3, %v1066_v23, -inf  ;;  %v1067_v27 = vadd.f32 %v1059_v25, %v415_v9  ;;  %v2482_v9 = vld [vmem:[%s3114_s6 + $0x40] sm:$0xff]  }
 0x17d   : > { %1088 = vmax.xlane.f32.xlu1 %v1087_v26  ;;  %1085 = vmax.xlane.f32.xlu0 %v1084_v12 }
 0x17e   : > { %v1090_v29 = vsel %vm1068_vm3, %v1067_v27, -inf  ;;  %2301 = vmatprep.subr.bf16.mxu1 %v2482_v9 }
 0x181   : > { %1091 = vmax.xlane.f32.xlu0 %v1090_v29 }
 0x1fe   : > { %v1071_v33 = vpop.xlane.xlu0 %1070 }
 0x1ff   : > { %v1093_v35 = vsub.f32 %v2847_v24, %v1071_v33 }
 0x201   : > { %v1101_v36 = vmul.f32 1.442695, %v1093_v35 }
 0x202   : > { %v1074_v34 = vpop.xlane.xlu1 %1073  ;;  %v1077_v37 = vpop.xlane.xlu0 %1076 }
 0x203   : > { %2520 = vpow2.f32 %v1101_v36  ;;  %v1094_v40 = vsub.f32 %v1061_v59, %v1074_v34  ;;  %v1095_v22 = vsub.f32 %v2852_v28, %v1077_v37 }
 0x205   : > { %v1103_v41 = vmul.f32 1.442695, %v1094_v40  ;;  %v1105_v42 = vmul.f32 1.442695, %v1095_v22 }
 0x206   : > { %v1083_v45 = vpop.xlane.xlu1 %1082  ;;  %v1080_v51 = vpop.xlane.xlu0 %1079 }
 0x207   : > { %2522 = vpow2.f32 %v1103_v41  ;;  %v1097_v52 = vsub.f32 %v1064_v62, %v1083_v45  ;;  %v1096_v53 = vsub.f32 %v1063_v54, %v1080_v51 }
 0x208   : > { %2524 = vpow2.f32 %v1105_v42 }
 0x209   : > { %v1109_v55 = vmul.f32 1.442695, %v1097_v52  ;;  %v1107_v60 = vmul.f32 1.442695, %v1096_v53 }
 0x20a   : > { %v1089_v49 = vpop.xlane.xlu1 %1088  ;;  %v1086_v61 = vpop.xlane.xlu0 %1085 }
 0x20b   : > { %2526 = vpow2.f32 %v1109_v55  ;;  %v1099_v24 = vsub.f32 %v1066_v23, %v1089_v49  ;;  %v1098_v63 = vsub.f32 %v1065_v20, %v1086_v61  ;;  %v2484_v23 = vld [vmem:[%s3114_s6 + $0xc0] sm:$0xff]  }
 0x20c   : > { %2528 = vpow2.f32 %v1107_v60  ;;  %2341 = vmatprep.subr.bf16.mxu0 %v2484_v23 }
 0x20d   : > { %v2881_v3 = vpop.eup %2520  ;;  %v1113_v59 = vmul.f32 1.442695, %v1099_v24  ;;  %v1111_v28 = vmul.f32 1.442695, %v1098_v63  ;;  %v2483_v24 = vld [vmem:[%s3114_s6] sm:$0xff]  }
 0x20e   : > { %v1092_v4 = vpop.xlane.xlu0 %1091  ;;  %v1117_v58 = vsel %vm1068_vm3, %v2881_v3, 0.0  ;;  %v2485_v63 = vld [vmem:[%s3114_s6 + $0x80] sm:$0xff]  }
 0x20f   : > { %2530 = vpow2.f32 %v1113_v59  ;;  %v1100_v6 = vsub.f32 %v1067_v27, %v1092_v4  ;;  %1118 = vadd.xlane.f32.xlu1 %v1117_v58  ;;  %v2486_v4 = vld [vmem:[%s3114_s6 + $0x48] sm:$0xff]  }
 0x210   : > { %2532 = vpow2.f32 %v1111_v28 }
 0x211   : > { %v2523_v54 = vpop.eup %2522  ;;  %v1115_v8 = vmul.f32 1.442695, %v1100_v6 }
 0x212   : > { %v2885_v10 = vpop.eup %2524  ;;  %v1120_v11 = vsel %vm1068_vm3, %v2523_v54, 0.0 }
 0x213   : > { %2534 = vpow2.f32 %v1115_v8  ;;  %1121 = vadd.xlane.f32.xlu0 %v1120_v11  ;;  %v1123_v13 = vsel %vm1068_vm3, %v2885_v10, 0.0 }
 0x214   : > { %1124 = vadd.xlane.f32.xlu1 %v1123_v13  ;;  %v2487_v13 = vld [vmem:[%s3114_s6 + $0x8] sm:$0xff]  }
 0x215   : > { %v2890_v62 = vpop.eup %2526 }
 0x216   : > { %v2892_v2 = vpop.eup %2528  ;;  %v1129_v14 = vsel %vm1068_vm3, %v2890_v62, 0.0 }
 0x217   : > { %v1126_v15 = vsel %vm1068_vm3, %v2892_v2, 0.0 }
 0x218   : > { %1130 = vadd.xlane.f32.xlu1 %v1129_v14  ;;  %1127 = vadd.xlane.f32.xlu0 %v1126_v15  ;;  %v2489_v14 = vld [vmem:[%s3114_s6 + $0x88] sm:$0xff]  }
 0x219   : > { %v2898_v16 = vpop.eup %2530 }
 0x21a   : > { %v2900_v17 = vpop.eup %2532  ;;  %v1135_v19 = vsel %vm1068_vm3, %v2898_v16, 0.0 }
 0x21b   : > { %v1132_v20 = vsel %vm1068_vm3, %v2900_v17, 0.0 }
 0x21c   : > { %1136 = vadd.xlane.f32.xlu1 %v1135_v19  ;;  %1133 = vadd.xlane.f32.xlu0 %v1132_v20  ;;  %v2490_v19 = vld [vmem:[%s3114_s6 + $0x50] sm:$0xff]  }
 0x21d   : > { %v2906_v21 = vpop.eup %2534 }
 0x21e   : > { %v1138_v7 = vsel %vm1068_vm3, %v2906_v21, 0.0 }
 0x220   : > { %1139 = vadd.xlane.f32.xlu0 %v1138_v7 }
 0x29c   : > { %v1119_v25 = vpop.xlane.xlu1 %1118 }
 0x29d   : > { %2536 = vrcp.f32 %v1119_v25 }
 0x2a0   : > { %v1122_v26 = vpop.xlane.xlu0 %1121 }
 0x2a1   : > { %v1125_v12 = vpop.xlane.xlu1 %1124  ;;  %2538 = vrcp.f32 %v1122_v26 }
 0x2a2   : > { %2540 = vrcp.f32 %v1125_v12 }
 0x2a5   : > { %v1128_v27 = vpop.xlane.xlu0 %1127  ;;  %v1131_v29 = vpop.xlane.xlu1 %1130 }
 0x2a6   : > { %2542 = vrcp.f32 %v1128_v27 }
 0x2a7   : > { %v2537_v18 = vpop.eup %2536  ;;  %2544 = vrcp.f32 %v1131_v29 }
 0x2a8   : > { %v1149_v30 = vmul.f32 %v2537_v18, %v1119_v25 }
 0x2a9   : > { %v1134_v31 = vpop.xlane.xlu0 %1133  ;;  %v1137_v41 = vpop.xlane.xlu1 %1136 }
 0x2aa   : > { %v1157_v32 = vsub.f32 2.0, %v1149_v30  ;;  %2546 = vrcp.f32 %v1134_v31 }
 0x2ab   : > { %v2539_v33 = vpop.eup %2538 }
 0x2ac   : > { %v2541_v35 = vpop.eup %2540  ;;  %v1150_v36 = vmul.f32 %v2539_v33, %v1122_v26  ;;  %v1165_v40 = vmul.f32 %v2537_v18, %v1157_v32 }
 0x2ad   : > { %v1151_v34 = vmul.f32 %v2541_v35, %v1125_v12  ;;  %v1140_v37 = vpop.xlane.xlu0 %1139  ;;  %v2491_v12 = vld [vmem:[%s3114_s6 + $0x10] sm:$0xff]  }
 0x2ae   : > { %v1158_v22 = vsub.f32 2.0, %v1150_v36  ;;  %2548 = vrcp.f32 %v1140_v37  ;;  %v1173_v52 = vmul.f32 %v2881_v3, %v1165_v40  ;;  %v2488_v3 = vld [vmem:[%s3114_s6 + $0xc8] sm:$0xff]   ;;  %v2498_v36 = vld [vmem:[%s3114_s6 + $0x60] sm:$0xff]  }
 0x2af   : > { %v1159_v51 = vsub.f32 2.0, %v1151_v34  ;;  %2550 = vrcp.f32 %v1137_v41 }
 0x2b0   : > { %v1166_v42 = vmul.f32 %v2539_v33, %v1158_v22  ;;  %v2543_v45 = vpop.eup %2542  ;;  %v2495_v33 = vld [vmem:[%s3114_s6 + $0x18] sm:$0xff]  }
 0x2b1   : > { %v1152_v55 = vmul.f32 %v2543_v45, %v1128_v27  ;;  %v2545_v60 = vpop.eup %2544  ;;  %v1167_v28 = vmul.f32 %v2541_v35, %v1159_v51  ;;  %v2493_v27 = vld [vmem:[%s3114_s6 + $0x90] sm:$0xff]   ;;  %v2497_v35 = vld [vmem:[%s3114_s6 + $0x98] sm:$0xff]  }
 0x2b2   : > { %v1174_v53 = vmul.f32 %v2523_v54, %v1166_v42  ;;  %v1153_v58 = vmul.f32 %v2545_v60, %v1131_v29  ;;  %v2496_v29 = vld [vmem:[%s3114_s6 + $0xd8] sm:$0xff]   ;;  %v2501_v42 = vld [vmem:[%s3114_s6 + $0xa0] sm:$0xff]  }
 0x2b3   : > { %v1160_v61 = vsub.f32 2.0, %v1152_v55  ;;  %v1175_v20 = vmul.f32 %v2885_v10, %v1167_v28  ;;  %v2494_v10 = vld [vmem:[%s3114_s6 + $0x58] sm:$0xff]   ;;  %v2505_v55 = vld [vmem:[%s3114_s6 + $0xa8] sm:$0xff]  }
 0x2b4   : > { %v1181_v49 = vpack.c.bf16 %v1174_v53, %v1173_v52  ;;  %v2547_v59 = vpop.eup %2546  ;;  %v1161_v7 = vsub.f32 2.0, %v1153_v58  ;;  %v2503_v53 = vld [vmem:[%s3114_s6 + $0x28] sm:$0xff]   ;;  %v2513_v28 = vld [vmem:[%s3114_s6 + $0xb8] sm:$0xff]   ;;  %v1371_v58 = vunpack.c.l.bf16 %v2772_v39 }
 0x2b5   : > { %v1168_v6 = vmul.f32 %v2543_v45, %v1160_v61  ;;  %v1154_v54 = vmul.f32 %v2547_v59, %v1134_v31  ;;  %v2502_v45 = vld [vmem:[%s3114_s6 + $0x68] sm:$0xff]   ;;  %v2507_v61 = vld [vmem:[%s3114_s6 + $0x30] sm:$0xff]  }
 0x2b6   : > { %2157 = vmatmul.mubr.msk.bf16.vlgmr.msra.gmra.mrb[16].mxu1 %vm1068_vm3, %v1181_v49  ;;  %2161 = vmatmul.mubr.msk.bf16.vlgmr.msra.gmra.mrb[24].mxu0 %vm1068_vm3, %v1181_v49  ;;  %v1169_v18 = vmul.f32 %v2545_v60, %v1161_v7 }
 0x2b7   : > { %1263 = vmatprep.mubr.bf16.mxu1 %v2586_v5  ;;  %1336 = vmatprep.mubr.bf16.mxu0 %v2586_v5  ;;  %v1176_v8 = vmul.f32 %v2892_v2, %v1168_v6  ;;  %v1162_v11 = vsub.f32 2.0, %v1154_v54  ;;  %v2492_v2 = vld [vmem:[%s3114_s6 + $0xd0] sm:$0xff]   ;;  %v1373_v6 = vunpack.c.l.bf16 %v2785_v44 }
 0x2b8   : > { %2302 = vmatpush3.bf16.msra.mxu1 %v2483_v24  ;;  %2342 = vmatpush3.bf16.msra.mxu0 %v2485_v63  ;;  %v2549_v15 = vpop.eup %2548  ;;  %v1177_v34 = vmul.f32 %v2890_v62, %v1169_v18  ;;  %v2504_v62 = vld [vmem:[%s3114_s6 + $0xe8] sm:$0xff]   ;;  %v2510_v24 = vld [vmem:[%s3114_s6 + $0x78] sm:$0xff]  }
 0x2b9   : > { %2303 = vmatprep.subr.bf16.mxu1 %v2486_v4  ;;  %2343 = vmatprep.subr.bf16.mxu0 %v2488_v3  ;;  %v2551_v9 = vpop.eup %2550  ;;  %v1170_v23 = vmul.f32 %v2547_v59, %v1162_v11  ;;  %v1156_v25 = vmul.f32 %v2549_v15, %v1140_v37  ;;  %v1182_v26 = vpack.c.bf16 %v1176_v8, %v1175_v20  ;;  %v2512_v63 = vld [vmem:[%s3114_s6 + $0xf8] sm:$0xff]   ;;  %v1367_v4 = vunpack.c.l.bf16 %v2769_v38 }
 0x2ba   : > { %v1155_v30 = vmul.f32 %v2551_v9, %v1137_v41  ;;  %v2499_v41 = vld [vmem:[%s3114_s6 + $0x20] sm:$0xff]   ;;  %v2511_v59 = vld [vmem:[%s3114_s6 + $0x38] sm:$0xff]   ;;  %v1369_v3 = vunpack.c.l.bf16 %v2782_v43  ;;  %v1368_v11 = vunpack.c.h.bf16 %v2769_v38 }
 0x2bb   : > { %v1178_v31 = vmul.f32 %v2900_v17, %v1170_v23  ;;  %v1164_v32 = vsub.f32 2.0, %v1156_v25  ;;  %v2500_v17 = vld [vmem:[%s3114_s6 + $0xe0] sm:$0xff]  }
 0x2bc   : > { %2304 = vmatpush3.bf16.msra.mxu1 %v2487_v13  ;;  %2344 = vmatpush3.bf16.msra.mxu0 %v2489_v14  ;;  %v1163_v37 = vsub.f32 2.0, %v1155_v30  ;;  %v1370_v13 = vunpack.c.h.bf16 %v2782_v43  ;;  %v1372_v14 = vunpack.c.h.bf16 %v2772_v39 }
 0x2bd   : > { %2305 = vmatprep.subr.bf16.mxu1 %v2490_v19  ;;  %2345 = vmatprep.subr.bf16.mxu0 %v2492_v2  ;;  %v1172_v40 = vmul.f32 %v2549_v15, %v1164_v32  ;;  %v1183_v22 = vpack.c.bf16 %v1178_v31, %v1177_v34  ;;  %v1374_v15 = vunpack.c.h.bf16 %v2785_v44  ;;  %v1375_v44 = vunpack.c.l.bf16 %v2790_v46 }
 0x2be   : > { %2158 = vmatmul.mubr.msk.bf16.gmra.mrb[20].mxu1 %vm1068_vm3, %v1182_v26  ;;  %2162 = vmatmul.mubr.msk.bf16.gmra.mrb[28].mxu0 %vm1068_vm3, %v1182_v26  ;;  %v1171_v51 = vmul.f32 %v2551_v9, %v1163_v37  ;;  %v1377_v32 = vunpack.c.l.bf16 %v2796_v48  ;;  %v1376_v34 = vunpack.c.h.bf16 %v2790_v46  ;;  %v1378_v37 = vunpack.c.h.bf16 %v2796_v48 }
 0x2bf   : > { %1273 = vmatprep.mubr.bf16.mxu1 %v2586_v5  ;;  %1346 = vmatprep.mubr.bf16.mxu0 %v2586_v5  ;;  %v1180_v52 = vmul.f32 %v2906_v21, %v1172_v40  ;;  %v2508_v21 = vld [vmem:[%s3114_s6 + $0xf0] sm:$0xff]   ;;  %v1380_v40 = vunpack.c.h.bf16 %v2793_v47 }
 0x2c0   : > { %2306 = vmatpush3.bf16.msra.mxu1 %v2491_v12  ;;  %2346 = vmatpush3.bf16.msra.mxu0 %v2493_v27  ;;  %v1179_v60 = vmul.f32 %v2898_v16, %v1171_v51  ;;  %v2509_v16 = vld [vmem:[%s3114_s6 + $0xb0] sm:$0xff]  }
 0x2c1   : > { %2307 = vmatprep.subr.bf16.mxu1 %v2494_v10  ;;  %2347 = vmatprep.subr.bf16.mxu0 %v2496_v29 }
 0x2c2   : > { %v1184_v49 = vpack.c.bf16 %v1180_v52, %v1179_v60 }
 0x2c4   : > { %2308 = vmatpush3.bf16.msra.mxu1 %v2495_v33  ;;  %2348 = vmatpush3.bf16.msra.mxu0 %v2497_v35  ;;  %v1379_v33 = vunpack.c.l.bf16 %v2793_v47  ;;  %v1381_v35 = vunpack.c.l.bf16 %v2801_v50 }
 0x2c5   : > { %2309 = vmatprep.subr.bf16.mxu1 %v2498_v36  ;;  %2349 = vmatprep.subr.bf16.mxu0 %v2500_v17 }
 0x2c6   : > { %2159 = vmatmul.mubr.msk.bf16.gmra.mrb[24].mxu1 %vm1068_vm3, %v1183_v22  ;;  %2163 = vmatmul.mubr.msk.bf16.gmra.mrb[32].mxu0 %vm1068_vm3, %v1183_v22  ;;  %v1382_v22 = vunpack.c.h.bf16 %v2801_v50 }
 0x2c7   : > { %1283 = vmatprep.mubr.bf16.mxu1 %v2586_v5  ;;  %1356 = vmatprep.mubr.bf16.mxu0 %v2586_v5  ;;  %v2506_v5 = vld [vmem:[%s3114_s6 + $0x70] sm:$0xff]  }
 0x2c8   : > { %2310 = vmatpush3.bf16.msra.mxu1 %v2499_v41  ;;  %2350 = vmatpush3.bf16.msra.mxu0 %v2501_v42 }
 0x2c9   : > { %2311 = vmatprep.subr.bf16.mxu1 %v2502_v45  ;;  %2351 = vmatprep.subr.bf16.mxu0 %v2504_v62 }
 0x2cc   : > { %2312 = vmatpush3.bf16.msra.mxu1 %v2503_v53  ;;  %2352 = vmatpush3.bf16.msra.mxu0 %v2505_v55 }
 0x2cd   : > { %2313 = vmatprep.subr.bf16.mxu1 %v2506_v5  ;;  %2353 = vmatprep.subr.bf16.mxu0 %v2508_v21 }
 0x2ce   : > { %2160 = vmatmul.mubr.msk.bf16.gmra.mrb[28].mxu1 %vm1068_vm3, %v1184_v49  ;;  %2164 = vmatmul.mubr.msk.bf16.gmra.mrb[36].mxu0 %vm1068_vm3, %v1184_v49 }
 0x2d0   : > { %2314 = vmatpush3.bf16.msra.mxu1 %v2507_v61  ;;  %2354 = vmatpush3.bf16.msra.mxu0 %v2509_v16 }
 0x2d1   : > { %2315 = vmatprep.subr.bf16.mxu1 %v2510_v24  ;;  %2355 = vmatprep.subr.bf16.mxu0 %v2512_v63  ;;  %v2568_v24 = vld [vmem:[%s2754_s22 + $0x40] sm:$0xff] }
 0x2d2   : > { %v1383_v63 = vunpack.c.l.bf16 %v2568_v24 }
 0x2d4   : > { %2316 = vmatpush3.bf16.msra.mxu1 %v2511_v59  ;;  %2356 = vmatpush3.bf16.msra.mxu0 %v2513_v28  ;;  %v1385_v59 = vunpack.c.l.bf16 %v2812_v56  ;;  %v2569_v28 = vld [vmem:[%s2754_s22 + $0x50] sm:$0xff] }
 0x389   : > { %v1255_v54 = vpop.f32.mrb[16].mxu1  ;;  %v1328_v8 = vpop.f32.mrb[24].mxu0 }
 0x38a   : > { %v1257_v19 = vpop.f32.mrb[17].mxu1  ;;  %v1330_v2 = vpop.f32.mrb[25].mxu0  ;;  %v1399_v9 = vmul.f32 %v1367_v4, %v1255_v54  ;;  %v1401_v23 = vmul.f32 %v1369_v3, %v1328_v8  ;;  %v1387_v4 = vunpack.c.l.bf16 %v2569_v28  ;;  %v1389_v3 = vunpack.c.l.bf16 %v2815_v57  ;;  %v2570_v8 = vld [vmem:[%s2754_s22 + $0x48] sm:$0xff] }
 0x38b   : > { %v1259_v20 = vpop.f32.mrb[18].mxu1  ;;  %v1332_v7 = vpop.f32.mrb[26].mxu0  ;;  %v1400_v10 = vmul.f32 %v1368_v11, %v1257_v19  ;;  %v1402_v29 = vmul.f32 %v1370_v13, %v1330_v2  ;;  %v1384_v54 = vunpack.c.h.bf16 %v2568_v24  ;;  %v1386_v11 = vunpack.c.h.bf16 %v2570_v8  ;;  %v2574_v24 = vld [vmem:[%s2667_s25] sm:$0xff]  }
 0x38c   : > { %v1403_v25 = vmul.f32 %v1371_v58, %v1259_v20  ;;  %v1405_v26 = vmul.f32 %v1373_v6, %v1332_v7  ;;  %v1261_v12 = vpop.f32.mrb[19].mxu1  ;;  %v1334_v27 = vpop.f32.mrb[27].mxu0  ;;  %v1388_v13 = vunpack.c.h.bf16 %v2569_v28 }
 0x38d   : > { %v1404_v18 = vmul.f32 %v1372_v14, %v1261_v12  ;;  %v1406_v38 = vmul.f32 %v1374_v15, %v1334_v27  ;;  %v2571_v14 = vld [vmem:[%s2754_s22 + $0x58] sm:$0xff] }
 0x38e   : > { %v1431_v30 = vpack.c.bf16 %v1403_v25, %v1399_v9  ;;  %v1433_v43 = vpack.c.bf16 %v1405_v26, %v1401_v23  ;;  %v1390_v15 = vunpack.c.h.bf16 %v2571_v14 }
 0x38f   : > { %v1432_v31 = vpack.c.bf16 %v1404_v18, %v1400_v10  ;;  %v1434_v39 = vpack.c.bf16 %v1406_v38, %v1402_v29 }
 0x391   : > { %v1265_v36 = vpop.f32.mrb[20].mxu1  ;;  %v1338_v17 = vpop.f32.mrb[28].mxu0  ;;  %1743 = vmatprep.mubr.bf16.mxu1 %v1432_v31  ;;  %1808 = vmatprep.mubr.bf16.mxu0 %v1434_v39  ;;  %v2572_v31 = vld [vmem:[%s2754_s22 + $0x60] sm:$0xff] }
 0x392   : > { %v1267_v41 = vpop.f32.mrb[21].mxu1  ;;  %v1340_v42 = vpop.f32.mrb[29].mxu0  ;;  %1744 = vmatmul.mubr.bf16.vlgmr.msra.gmra.mrb[32].mxu1 %v1431_v30  ;;  %1809 = vmatmul.mubr.bf16.vlgmr.msra.gmra.mrb[40].mxu0 %v1433_v43  ;;  %v1407_v51 = vmul.f32 %v1375_v44, %v1265_v36  ;;  %v1409_v52 = vmul.f32 %v1377_v32, %v1338_v17  ;;  %v1391_v39 = vunpack.c.l.bf16 %v2572_v31  ;;  %v1393_v44 = vunpack.c.l.bf16 %v2824_v0  ;;  %v2573_v32 = vld [vmem:[%s2754_s22 + $0x70] sm:$0xff] }
 0x393   : > { %v1269_v45 = vpop.f32.mrb[22].mxu1  ;;  %v1342_v62 = vpop.f32.mrb[30].mxu0  ;;  %v1408_v49 = vmul.f32 %v1376_v34, %v1267_v41  ;;  %v1410_v48 = vmul.f32 %v1378_v37, %v1340_v42  ;;  %v1392_v34 = vunpack.c.h.bf16 %v2572_v31  ;;  %v1394_v37 = vunpack.c.h.bf16 %v2824_v0 }
 0x394   : > { %v1411_v53 = vmul.f32 %v1379_v33, %v1269_v45  ;;  %v1413_v55 = vmul.f32 %v1381_v35, %v1342_v62  ;;  %v1271_v60 = vpop.f32.mrb[23].mxu1  ;;  %v1344_v46 = vpop.f32.mrb[31].mxu0  ;;  %v1395_v33 = vunpack.c.l.bf16 %v2573_v32  ;;  %v1397_v35 = vunpack.c.l.bf16 %v2827_v1 }
 0x395   : > { %v1412_v5 = vmul.f32 %v1380_v40, %v1271_v60  ;;  %v1414_v47 = vmul.f32 %v1382_v22, %v1344_v46  ;;  %v1396_v40 = vunpack.c.h.bf16 %v2573_v32  ;;  %v1398_v22 = vunpack.c.h.bf16 %v2827_v1 }
 0x396   : > { %v1435_v50 = vpack.c.bf16 %v1411_v53, %v1407_v51  ;;  %v1437_v21 = vpack.c.bf16 %v1413_v55, %v1409_v52 }
 0x397   : > { %v1436_v61 = vpack.c.bf16 %v1412_v5, %v1408_v49  ;;  %v1438_v16 = vpack.c.bf16 %v1414_v47, %v1410_v48 }
 0x399   : > { %v1275_v58 = vpop.f32.mrb[24].mxu1  ;;  %v1348_v6 = vpop.f32.mrb[32].mxu0  ;;  %1751 = vmatprep.mubr.bf16.mxu1 %v1436_v61  ;;  %1816 = vmatprep.mubr.bf16.mxu0 %v1438_v16  ;;  %v2514_v61 = vld [vmem:[%s3115_s7] sm:$0xff]   ;;  %v2515_v16 = vld [vmem:[%s3115_s7 + $0x8] sm:$0xff]  }
 0x39a   : > { %v1277_v19 = vpop.f32.mrb[25].mxu1  ;;  %v1350_v2 = vpop.f32.mrb[33].mxu0  ;;  %1752 = vmatmul.mubr.bf16.gmra.mrb[36].mxu1 %v1435_v50  ;;  %1817 = vmatmul.mubr.bf16.gmra.mrb[44].mxu0 %v1437_v21  ;;  %v1415_v7 = vmul.f32 %v1383_v63, %v1275_v58  ;;  %v1417_v9 = vmul.f32 %v1385_v59, %v1348_v6  ;;  %v1511_v63 = vunpack.c.l.bf16 %v2574_v24  ;;  %v1512_v58 = vunpack.c.h.bf16 %v2574_v24 }
 0x39b   : > { %v1279_v20 = vpop.f32.mrb[26].mxu1  ;;  %v1352_v56 = vpop.f32.mrb[34].mxu0  ;;  %v1416_v12 = vmul.f32 %v1384_v54, %v1277_v19  ;;  %v1418_v27 = vmul.f32 %v1386_v11, %v1350_v2  ;;  %2399 = vmatprep.subr.bf16.mxu1 %v2514_v61 }
 0x39c   : > { %v1419_v57 = vmul.f32 %v1387_v4, %v1279_v20  ;;  %v1421_v23 = vmul.f32 %v1389_v3, %v1352_v56  ;;  %v1281_v25 = vpop.f32.mrb[27].mxu1  ;;  %v1354_v26 = vpop.f32.mrb[35].mxu0  ;;  %2400 = vmatpush3.bf16.msra.mxu1 %v2514_v61 }
 0x39d   : > { %v1420_v10 = vmul.f32 %v1388_v13, %v1281_v25  ;;  %v1422_v29 = vmul.f32 %v1390_v15, %v1354_v26  ;;  %2401 = vmatprep.subr.bf16.mxu1 %v2515_v16  ;;  %v2575_v25 = vld [vmem:[%s2667_s25 + $0x8] sm:$0xff]  }
 0x39e   : > { %v1439_v18 = vpack.c.bf16 %v1419_v57, %v1415_v7  ;;  %v1441_v38 = vpack.c.bf16 %v1421_v23, %v1417_v9  ;;  %v1513_v26 = vunpack.c.l.bf16 %v2575_v25 }
 0x39f   : > { %v1440_v30 = vpack.c.bf16 %v1420_v10, %v1416_v12  ;;  %v1442_v43 = vpack.c.bf16 %v1422_v29, %v1418_v27 }
 0x3a0   : > { %2402 = vmatpush3.bf16.msra.mxu1 %v2515_v16 }
 0x3a1   : > { %v1285_v36 = vpop.f32.mrb[28].mxu1  ;;  %v1358_v17 = vpop.f32.mrb[36].mxu0  ;;  %1759 = vmatprep.mubr.bf16.mxu1 %v1440_v30  ;;  %1824 = vmatprep.mubr.bf16.mxu0 %v1442_v43  ;;  %v1514_v43 = vunpack.c.h.bf16 %v2575_v25 }
 0x3a2   : > { %v1287_v41 = vpop.f32.mrb[29].mxu1  ;;  %v1360_v42 = vpop.f32.mrb[37].mxu0  ;;  %1760 = vmatmul.mubr.bf16.gmra.mrb[40].mxu1 %v1439_v18  ;;  %1825 = vmatmul.mubr.bf16.gmra.mrb[48].mxu0 %v1441_v38  ;;  %v1423_v51 = vmul.f32 %v1391_v39, %v1285_v36  ;;  %v1425_v52 = vmul.f32 %v1393_v44, %v1358_v17 }
 0x3a3   : > { %v1289_v45 = vpop.f32.mrb[30].mxu1  ;;  %v1362_v62 = vpop.f32.mrb[38].mxu0  ;;  %v1424_v49 = vmul.f32 %v1392_v34, %v1287_v41  ;;  %v1426_v48 = vmul.f32 %v1394_v37, %v1360_v42  ;;  %v2576_v42 = vld [vmem:[%s2667_s25 + $0x10] sm:$0xff]  }
 0x3a4   : > { %v1427_v53 = vmul.f32 %v1395_v33, %v1289_v45  ;;  %v1429_v55 = vmul.f32 %v1397_v35, %v1362_v62  ;;  %v1291_v60 = vpop.f32.mrb[31].mxu1  ;;  %v1364_v46 = vpop.f32.mrb[39].mxu0  ;;  %v1515_v45 = vunpack.c.l.bf16 %v2576_v42 }
 0x3a5   : > { %v1428_v5 = vmul.f32 %v1396_v40, %v1291_v60  ;;  %v1430_v0 = vmul.f32 %v1398_v22, %v1364_v46 }
 0x3a6   : > { %v1443_v47 = vpack.c.bf16 %v1427_v53, %v1423_v51  ;;  %v1445_v50 = vpack.c.bf16 %v1429_v55, %v1425_v52 }
 0x3a7   : > { %v1444_v1 = vpack.c.bf16 %v1428_v5, %v1424_v49  ;;  %v1446_v21 = vpack.c.bf16 %v1430_v0, %v1426_v48  ;;  %v1516_v49 = vunpack.c.h.bf16 %v2576_v42 }
 0x3a9   : > { %1767 = vmatprep.mubr.bf16.mxu1 %v1444_v1  ;;  %1832 = vmatprep.mubr.bf16.mxu0 %v1446_v21 }
 0x3aa   : > { %1768 = vmatmul.mubr.bf16.gmra.mrb[44].mxu1 %v1443_v47  ;;  %1833 = vmatmul.mubr.bf16.gmra.mrb[52].mxu0 %v1445_v50 }
 0x465   : > { %v2317_v59 = vpop.f32.mrb[32].mxu1  ;;  %v2357_v28 = vpop.f32.mrb[40].mxu0 }
 0x466   : > { %v2318_v4 = vpop.f32.mrb[33].mxu1  ;;  %v2358_v3 = vpop.f32.mrb[41].mxu0 }
 0x467   : > { %v2319_v6 = vadd.f32 %v2318_v4, %v2317_v59  ;;  %v2359_v54 = vadd.f32 %v2358_v3, %v2357_v28  ;;  %v2320_v8 = vpop.f32.mrb[34].mxu1  ;;  %v2360_v11 = vpop.f32.mrb[42].mxu0 }
 0x468   : > { %v2321_v13 = vpop.f32.mrb[35].mxu1  ;;  %v2361_v14 = vpop.f32.mrb[43].mxu0 }
 0x469   : > { %v1746_v15 = vadd.f32 %v2319_v6, %v1511_v63  ;;  %v2322_v19 = vadd.f32 %v2321_v13, %v2320_v8  ;;  %v2362_v2 = vadd.f32 %v2361_v14, %v2360_v11  ;;  %v2577_v6 = vld [vmem:[%s2667_s25 + $0x18] sm:$0xff]  }
 0x46a   : > { %v1518_v14 = vunpack.c.h.bf16 %v2577_v6 }
 0x46b   : > { %v3062_v20 = vadd.f32 %v2359_v54, %v1746_v15  ;;  %v1749_v56 = vadd.f32 %v2322_v19, %v1512_v58  ;;  %v1517_v54 = vunpack.c.l.bf16 %v2577_v6 }
 0x46d   : > { %v1849_v7 = vmin.f32 %v3062_v20, 0.0  ;;  %v3065_v9 = vadd.f32 %v2362_v2, %v1749_v56  ;;  %v2323_v57 = vpop.f32.mrb[36].mxu1  ;;  %v2363_v23 = vpop.f32.mrb[44].mxu0  ;;  %vm1841_vm10 = vcmp.gt.f32.partialorder %v3062_v20, 0.0 }
 0x46e   : > { %v2324_v12 = vpop.f32.mrb[37].mxu1  ;;  %v2364_v27 = vpop.f32.mrb[45].mxu0 }
 0x46f   : > { %v1857_v10 = vmul.f32 1.442695, %v1849_v7  ;;  %v1850_v29 = vmin.f32 %v3065_v9, 0.0  ;;  %v2325_v18 = vadd.f32 %v2324_v12, %v2323_v57  ;;  %v2326_v38 = vpop.f32.mrb[38].mxu1  ;;  %v2366_v30 = vpop.f32.mrb[46].mxu0  ;;  %v2365_v31 = vadd.f32 %v2364_v27, %v2363_v23 }
 0x470   : > { %v2327_v39 = vpop.f32.mrb[39].mxu1  ;;  %v2367_v44 = vpop.f32.mrb[47].mxu0  ;;  %vm1842_vm11 = vcmp.gt.f32.partialorder %v3065_v9, 0.0 }
 0x471   : > { %2552 = vpow2.f32 %v1857_v10  ;;  %v1859_v32 = vmul.f32 1.442695, %v1850_v29  ;;  %v1754_v33 = vadd.f32 %v2325_v18, %v1513_v26  ;;  %v2328_v35 = vadd.f32 %v2327_v39, %v2326_v38 }
 0x472   : > { %v2368_v36 = vadd.f32 %v2367_v44, %v2366_v30 }
 0x473   : > { %2554 = vpow2.f32 %v1859_v32  ;;  %v3069_v17 = vadd.f32 %v2365_v31, %v1754_v33  ;;  %v1757_v34 = vadd.f32 %v2328_v35, %v1514_v43 }
 0x475   : > { %v1851_v37 = vmin.f32 %v3069_v17, 0.0  ;;  %v3072_v40 = vadd.f32 %v2368_v36, %v1757_v34  ;;  %v2329_v22 = vpop.f32.mrb[40].mxu1  ;;  %v2369_v41 = vpop.f32.mrb[48].mxu0  ;;  %vm1843_vm12 = vcmp.gt.f32.partialorder %v3069_v17, 0.0 }
 0x476   : > { %v2330_v62 = vpop.f32.mrb[41].mxu1  ;;  %v2370_v51 = vpop.f32.mrb[49].mxu0 }
 0x477   : > { %v1861_v52 = vmul.f32 1.442695, %v1851_v37  ;;  %v1852_v53 = vmin.f32 %v3072_v40, 0.0  ;;  %v2331_v55 = vadd.f32 %v2330_v62, %v2329_v22  ;;  %v2332_v60 = vpop.f32.mrb[42].mxu1  ;;  %v2372_v46 = vpop.f32.mrb[50].mxu0  ;;  %v2371_v48 = vadd.f32 %v2370_v51, %v2369_v41 }
 0x478   : > { %v2333_v5 = vpop.f32.mrb[43].mxu1  ;;  %v2373_v0 = vpop.f32.mrb[51].mxu0  ;;  %vm1844_vm13 = vcmp.gt.f32.partialorder %v3072_v40, 0.0 }
 0x479   : > { %2556 = vpow2.f32 %v1861_v52  ;;  %v1863_v47 = vmul.f32 1.442695, %v1852_v53  ;;  %v1762_v50 = vadd.f32 %v2331_v55, %v1515_v45  ;;  %v2334_v1 = vadd.f32 %v2333_v5, %v2332_v60  ;;  %v2205_v5 = vld [vmem:[%s3116_s8] ss:$0 sm:$0xff] }
 0x47a   : > { %v2374_v21 = vadd.f32 %v2373_v0, %v2372_v46 }
 0x47b   : > { %v2553_v61 = vpop.eup %2552  ;;  %2558 = vpow2.f32 %v1863_v47  ;;  %v1827_v16 = vadd.f32 %v2371_v48, %v1762_v50  ;;  %v1765_v24 = vadd.f32 %v2334_v1, %v1516_v49 }
 0x47c   : > { %v2197_v63 = vadd.f32 -1.0, %v2553_v61 }
 0x47d   : > { %v2555_v59 = vpop.eup %2554  ;;  %v1853_v28 = vmin.f32 %v1827_v16, 0.0  ;;  %v1830_v4 = vadd.f32 %v2374_v21, %v1765_v24  ;;  %v2335_v3 = vpop.f32.mrb[44].mxu1  ;;  %vm1845_vm14 = vcmp.gt.f32.partialorder %v1827_v16, 0.0 }
 0x47e   : > { %v2375_v58 = vpop.f32.mrb[52].mxu0  ;;  %v2198_v8 = vadd.f32 -1.0, %v2555_v59  ;;  %v2336_v11 = vpop.f32.mrb[45].mxu1  ;;  %v1881_v57 = vsel %vm1841_vm10, %v3062_v20, %v2197_v63 }
 0x47f   : > { %v2376_v13 = vpop.f32.mrb[53].mxu0  ;;  %v1865_v15 = vmul.f32 1.442695, %v1853_v28  ;;  %v1854_v19 = vmin.f32 %v1830_v4, 0.0  ;;  %v2337_v2 = vadd.f32 %v2336_v11, %v2335_v3  ;;  %v2338_v56 = vpop.f32.mrb[46].mxu1  ;;  %vm1846_vm15 = vcmp.gt.f32.partialorder %v1830_v4, 0.0 }
 0x480   : > { %v2378_v7 = vpop.f32.mrb[54].mxu0  ;;  %v1882_v23 = vsel %vm1842_vm11, %v3065_v9, %v2198_v8  ;;  %v2377_v25 = vadd.f32 %v2376_v13, %v2375_v58  ;;  %v2339_v26 = vpop.f32.mrb[47].mxu1 }
 0x481   : > { %v2379_v12 = vpop.f32.mrb[55].mxu0  ;;  %2560 = vpow2.f32 %v1865_v15  ;;  %v1867_v27 = vmul.f32 1.442695, %v1854_v19  ;;  %v1770_v10 = vadd.f32 %v2337_v2, %v1517_v54  ;;  %v2340_v29 = vadd.f32 %v2339_v26, %v2338_v56 }
 0x482   : > { %v2380_v18 = vadd.f32 %v2379_v12, %v2378_v7  ;;  %v1889_v38 = vpack.c.bf16 %v1882_v23, %v1881_v57 }
 0x483   : > { %v2557_v30 = vpop.eup %2556  ;;  %2562 = vpow2.f32 %v1867_v27  ;;  %v1835_v43 = vadd.f32 %v2377_v25, %v1770_v10  ;;  %v1773_v31 = vadd.f32 %v2340_v29, %v1518_v14 }
 0x484   : > { %v2199_v39 = vadd.f32 -1.0, %v2557_v30  ;;  %2403 = vmatprep.mubr.msk.bf16.mxu1 %vm452_vm0, %v1889_v38 }
 0x485   : > { %v2559_v44 = vpop.eup %2558  ;;  %v1855_v20 = vmin.f32 %v1835_v43, 0.0  ;;  %v1838_v32 = vadd.f32 %v2380_v18, %v1773_v31  ;;  %vm1847_vm1 = vcmp.gt.f32.partialorder %v1835_v43, 0.0 }
 0x486   : > { %v2200_v9 = vadd.f32 -1.0, %v2559_v44  ;;  %v1883_v36 = vsel %vm1843_vm12, %v3069_v17, %v2199_v39 }
 0x487   : > { %v1869_v33 = vmul.f32 1.442695, %v1855_v20  ;;  %v1856_v35 = vmin.f32 %v1838_v32, 0.0  ;;  %vm1848_vm2 = vcmp.gt.f32.partialorder %v1838_v32, 0.0 }
 0x488   : > { %v1884_v34 = vsel %vm1844_vm13, %v3072_v40, %v2200_v9 }
 0x489   : > { %v1890_v37 = vpack.c.bf16 %v1884_v34, %v1883_v36  ;;  %2564 = vpow2.f32 %v1869_v33  ;;  %v1871_v22 = vmul.f32 1.442695, %v1856_v35 }
 0x48b   : > { %v2561_v41 = vpop.eup %2560  ;;  %2566 = vpow2.f32 %v1871_v22  ;;  %2404 = vmatmul.mubr.msk.bf16.vlgmr.msra.gmra.mrb[48].mxu1 %vm452_vm0, %v1890_v37 }
 0x48c   : > { %v2201_v42 = vadd.f32 -1.0, %v2561_v41 }
 0x48d   : > { %v2563_v45 = vpop.eup %2562 }
 0x48e   : > { %v2202_v62 = vadd.f32 -1.0, %v2563_v45  ;;  %v1885_v51 = vsel %vm1845_vm14, %v1827_v16, %v2201_v42 }
 0x490   : > { %v1886_v52 = vsel %vm1846_vm15, %v1830_v4, %v2202_v62 }
 0x491   : > { %v1891_v53 = vpack.c.bf16 %v1886_v52, %v1885_v51 }
 0x493   : > { %v2565_v55 = vpop.eup %2564  ;;  %2407 = vmatprep.mubr.msk.bf16.mxu1 %vm452_vm0, %v1891_v53 }
 0x494   : > { %v2203_v17 = vadd.f32 -1.0, %v2565_v55 }
 0x495   : > { %v2567_v40 = vpop.eup %2566 }
 0x496   : > { %v2204_v60 = vadd.f32 -1.0, %v2567_v40  ;;  %v1887_v46 = vsel %vm1847_vm1, %v1835_v43, %v2203_v17 }
 0x498   : > { %v1888_v49 = vsel %vm1848_vm2, %v1838_v32, %v2204_v60 }
 0x499   : > { %v1892_v48 = vpack.c.bf16 %v1888_v49, %v1887_v46 }
 0x49b   : > { %2408 = vmatmul.mubr.msk.bf16.gmra.mrb[52].mxu1 %vm452_vm0, %v1892_v48 }
 0x55e   : > { %v2405_v0 = vpop.f32.mrb[48].mxu1 }
 0x55f   : > { %v1971_v47 = vadd.f32 %v2405_v0, %v2205_v5  ;;  %v1962_v50 = vpop.f32.mrb[49].mxu1 }
 0x560   : > { %v1963_v1 = vadd.f32 %v2205_v5, %v1962_v50  ;;  %v2406_v21 = vpop.f32.mrb[50].mxu1 }
 0x561   : > { %1995 = vst.msk [vmem:[%s381_s17 + $0x10] sm:$0xff] %vm452_vm0, %v1971_v47  ;;  %v1974_v61 = vadd.f32 %v2406_v21, %v2205_v5  ;;  %v1965_v16 = vpop.f32.mrb[51].mxu1 }
 0x562   : > { %1993 = vst.msk [vmem:[%s381_s17] sm:$0xff] %vm452_vm0, %v1963_v1  ;;  %v1966_v24 = vadd.f32 %v2205_v5, %v1965_v16 }
 0x563   : > { %1996 = vst.msk [vmem:[%s381_s17 + $0x18] sm:$0xff] %vm452_vm0, %v1974_v61 }
 0x564   : > { %1994 = vst.msk [vmem:[%s381_s17 + $0x8] sm:$0xff] %vm452_vm0, %v1966_v24 }
 0x56e   : > { %v2409_v63 = vpop.f32.mrb[52].mxu1 }
 0x56f   : > { %v1987_v59 = vadd.f32 %v2409_v63, %v2205_v5  ;;  %v1978_v28 = vpop.f32.mrb[53].mxu1 }
 0x570   : > { %v1979_v4 = vadd.f32 %v2205_v5, %v1978_v28  ;;  %v2410_v3 = vpop.f32.mrb[54].mxu1 }
 0x571   : > { %1999 = vst.msk [vmem:[%s381_s17 + $0x30] sm:$0xff] %vm452_vm0, %v1987_v59  ;;  %v1990_v58 = vadd.f32 %v2410_v3, %v2205_v5  ;;  %v1981_v6 = vpop.f32.mrb[55].mxu1 }
 0x572   : > { %1997 = vst.msk [vmem:[%s381_s17 + $0x20] sm:$0xff] %vm452_vm0, %v1979_v4  ;;  %v1982_v54 = vadd.f32 %v2205_v5, %v1981_v6 }
 0x573   : > { %2000 = vst.msk [vmem:[%s381_s17 + $0x38] sm:$0xff] %vm452_vm0, %v1990_v58 }
 0x574   : > { %1998 = vst.msk [vmem:[%s381_s17 + $0x28] sm:$0xff] %vm452_vm0, %v1982_v54 }
 0x575 PF: > { %s19_s30 = sadd.s32 1, %s2584_s30  }
 0x576   : > { %p16_p4 = scmp.ge.s32.totalorder %s19_s30, 6  }
 0x578   :  { %18 = sbr.rel (!%p16_p4) target bundleno = 1 (0x1), region = 92 }

// kernel: _gat_forward_impl.1
= control target key start
LH: loop header
LB: loop body
LE: loop exit
PB: predicated region body
PF: predicated region fallthrough
CT: control target
= control target key end

     0   :  { %s2637_s30 = smov 0   ;;  %s3108_s0 = inlined_call_operand.vmem [shape: bf16[256,32], index: 0, kind: input, shape index: {}]   ;;  %s3109_s1 = inlined_call_operand.vmem [shape: bf16[256,512], index: 1, kind: input, shape index: {}]   ;;  %s3110_s2 = inlined_call_operand.vmem [shape: f32[256,16], index: 2, kind: input, shape index: {}]   ;;  %s3111_s3 = inlined_call_operand.vmem [shape: bf16[32,1], index: 3, kind: input, shape index: {}]   ;;  %s3112_s4 = inlined_call_operand.vmem [shape: bf16[512,16], index: 4, kind: input, shape index: {}]   ;;  %s3113_s5 = inlined_call_operand.vmem [shape: bf16[16,512], index: 5, kind: input, shape index: {}]   ;;  %s3114_s6 = inlined_call_operand.vmem [shape: bf16[512,32], index: 6, kind: input, shape index: {}]   ;;  %s3115_s7 = inlined_call_operand.vmem [shape: bf16[32,32], index: 7, kind: input, shape index: {}]   ;;  %s3116_s8 = inlined_call_operand.vmem [shape: f32[1,32], index: 8, kind: input, shape index: {}]   ;;  %s3117_s9 = inlined_call_operand.vmem [shape: f32[256,32], index: 9, kind: output, shape index: {}]  }
   0x1 LB: > { %s2081_s10 = sadd.s32 4294967295, %s2584_s30   ;;  %p2085_p0 = scmp.ge.s32.totalorder %s2584_s30, 1  ;;  %s2584_s30 = sphi %s2637_s30, %s19_s30  }
   0x2   : > { %p311_p1 = scmp.lt.s32.totalorder %s2584_s30, 5 }
   0x4   : > { %p312_p2 = pnand %p2085_p0, %p311_p1 }
   0x5   : > { %v2422_v0 = vld [vmem:[%s3111_s3] sm:$0xff] (!%p312_p2)   ;;  %s2086_s13 = sshll.u32 (!%p312_p2), %s2081_s10, 3  ;;  %v2423_v1 = vld [vmem:[%s3111_s3 + $0x8] sm:$0xff] (!%p312_p2)   ;;  %v2586_v5 = vmov (!%p312_p2), 0   ;;  %vm452_vm0 = vcmask (!%p312_p2), 261120   ;;  %v2436_v15 = vld [vmem:[%s3112_s4 + $0x50] sm:$0xff] (!%p312_p2)  }
   0x6   : > { %315 = sbr.rel (%p312_p2) target bundleno = 1397 (0x575), region = 56  ;;  %p359_p3 = scmp.lt.s32.totalorder (!%p312_p2), %s2086_s13, 31  ;;  %2387 = vmatprep.subr.bf16.mxu0 (!%p312_p2), %v2422_v0  ;;  %v2428_v2 = vld [vmem:[%s3112_s4 + $0x40] sm:$0xff] (!%p312_p2)   ;;  %2421 = vset.pattern.permute.xlu1 (!%p312_p2), %v2586_v5  ;;  %v2432_v10 = vld [vmem:[%s3112_s4 + $0x48] sm:$0xff] (!%p312_p2)   ;;  %v2437_v16 = vld [vmem:[%s3112_s4 + $0x10] sm:$0xff] (!%p312_p2)   ;;  %vm1068_vm3 = vcmask (!%p312_p2), 130048  }
   0x7   : > { %2388 = vmatpush3.bf16.msra.mxu0 (!%p312_p2), %v2422_v0  ;;  %v2429_v3 = vld [vmem:[%s3112_s4] sm:$0xff] (!%p312_p2)   ;;  %2221 = vmatprep.subr.bf16.mxu1 (!%p312_p2), %v2428_v2  ;;  %v2433_v11 = vld [vmem:[%s3112_s4 + $0x8] sm:$0xff] (!%p312_p2)   ;;  %v2438_v17 = vld [vmem:[%s3112_s4 + $0xd0] sm:$0xff] (!%p312_p2)  }
   0x8   : > { %2389 = vmatprep.subr.bf16.mxu0 (!%p312_p2), %v2423_v1  ;;  %v2430_v4 = vld [vmem:[%s3112_s4 + $0xc0] sm:$0xff] (!%p312_p2)   ;;  %2222 = vmatpush3.bf16.msra.mxu1 (!%p312_p2), %v2429_v3  ;;  %v2434_v13 = vld [vmem:[%s3112_s4 + $0xc8] sm:$0xff] (!%p312_p2)   ;;  %v2439_v18 = vld [vmem:[%s3112_s4 + $0x90] sm:$0xff] (!%p312_p2)  }
   0x9   : > { %2420 = vset.pattern.permute.xlu0 (!%p312_p2), %v2586_v5  ;;  %v2431_v9 = vld [vmem:[%s3112_s4 + $0x80] sm:$0xff] (!%p312_p2)   ;;  %2223 = vmatprep.subr.bf16.mxu1 (!%p312_p2), %v2432_v10  ;;  %v2435_v14 = vld [vmem:[%s3112_s4 + $0x88] sm:$0xff] (!%p312_p2)   ;;  %v2440_v19 = vld [vmem:[%s3112_s4 + $0x58] sm:$0xff] (!%p312_p2)  }
   0xa   : > { %v2441_v20 = vld [vmem:[%s3112_s4 + $0x18] sm:$0xff] (!%p312_p2)   ;;  %v2444_v23 = vld [vmem:[%s3112_s4 + $0x60] sm:$0xff] (!%p312_p2)   ;;  %v2448_v27 = vld [vmem:[%s3112_s4 + $0x68] sm:$0xff] (!%p312_p2)  }
   0xb   : > { %2390 = vmatpush3.bf16.msra.mxu0 (!%p312_p2), %v2423_v1  ;;  %v2442_v21 = vld [vmem:[%s3112_s4 + $0xd8] sm:$0xff] (!%p312_p2)   ;;  %v2445_v24 = vld [vmem:[%s3112_s4 + $0x20] sm:$0xff] (!%p312_p2)   ;;  %v2449_v28 = vld [vmem:[%s3112_s4 + $0x28] sm:$0xff] (!%p312_p2)  }
   0xc   : > { %2261 = vmatprep.subr.bf16.mxu0 (!%p312_p2), %v2430_v4  ;;  %2224 = vmatpush3.bf16.msra.mxu1 (!%p312_p2), %v2433_v11  ;;  %v2443_v22 = vld [vmem:[%s3112_s4 + $0x98] sm:$0xff] (!%p312_p2)   ;;  %v2446_v25 = vld [vmem:[%s3112_s4 + $0xe0] sm:$0xff] (!%p312_p2)   ;;  %v2450_v29 = vld [vmem:[%s3112_s4 + $0xe8] sm:$0xff] (!%p312_p2)  }
   0xd   : > { %s3119_s13 = smov (!%p359_p3, %s2086_s13), 31  ;;  %2225 = vmatprep.subr.bf16.mxu1 %v2436_v15  ;;  %v2447_v26 = vld [vmem:[%s3112_s4 + $0xa0] sm:$0xff]   ;;  %v2451_v30 = vld [vmem:[%s3112_s4 + $0xa8] sm:$0xff]   ;;  %v2452_v31 = vld [vmem:[%s3112_s4 + $0x70] sm:$0xff]  }
   0xe   : > { %s2087_s22 = sshll.u32 %s3119_s13, 2  ;;  %s2214_s12 = sshll.u32 %s3119_s13, 4  ;;  %v2453_v32 = vld [vmem:[%s3112_s4 + $0x30] sm:$0xff]   ;;  %v2456_v35 = vld [vmem:[%s3112_s4 + $0x78] sm:$0xff]  }
   0xf   : > { %s2667_s25 = scalar_lea.vmem %s3108_s0, %s2087_s22  ;;  %v2454_v33 = vld [vmem:[%s3112_s4 + $0xf0] sm:$0xff]   ;;  %s2754_s22 = scalar_lea.vmem %s3109_s1, %s2214_s12  ;;  %v2457_v36 = vld [vmem:[%s3112_s4 + $0x38] sm:$0xff]  }
  0x10   : > { %v384_v6 = vld [vmem:[%s2667_s25] sm:$0xff]   ;;  %v386_v7 = vld [vmem:[%s2667_s25 + $0x8] sm:$0xff]   ;;  %v388_v8 = vld [vmem:[%s2667_s25 + $0x10] sm:$0xff]   ;;  %2226 = vmatpush3.bf16.msra.mxu1 %v2437_v16  ;;  %s2092_s15 = sshll.u32 %s3119_s13, 3 }
  0x11   : > { %2391 = vmatprep.mubr.msk.bf16.mxu0 %vm452_vm0, %v384_v6  ;;  %v390_v12 = vld [vmem:[%s2667_s25 + $0x18] sm:$0xff]   ;;  %2227 = vmatprep.subr.bf16.mxu1 %v2440_v19  ;;  %v2455_v34 = vld [vmem:[%s3112_s4 + $0xb0] sm:$0xff]   ;;  %v2769_v38 = vld [vmem:[%s2754_s22] sm:$0xff]  ;;  %s2843_s18 = scalar_lea.vmem %s3110_s2, %s2092_s15  ;;  %s381_s17 = scalar_lea.vmem %s3117_s9, %s2092_s15 }
  0x12   : > { %2392 = vmatmul.mubr.msk.bf16.vlgmr.msra.gmra.mrb[0].mxu0 %vm452_vm0, %v386_v7  ;;  %v2458_v37 = vld [vmem:[%s3112_s4 + $0xf8] sm:$0xff]   ;;  %v2772_v39 = vld [vmem:[%s2754_s22 + $0x10] sm:$0xff]  ;;  %v2782_v43 = vld [vmem:[%s2754_s22 + $0x8] sm:$0xff] }
  0x13   : > { %2395 = vmatprep.mubr.msk.bf16.mxu0 %vm452_vm0, %v388_v8  ;;  %2262 = vmatpush3.bf16.msra.mxu0 %v2431_v9  ;;  %v2106_v40 = vcombine.high %v2769_v38, %v2772_v39  ;;  %v2460_v41 = vld [vmem:[%s3112_s4 + $0xb8] sm:$0xff]   ;;  %v2105_v42 = vcombine.low %v2769_v38, %v2772_v39  ;;  %v2790_v46 = vld [vmem:[%s2754_s22 + $0x20] sm:$0xff]  ;;  %v2793_v47 = vld [vmem:[%s2754_s22 + $0x30] sm:$0xff] }
  0x14   : > { %2263 = vmatprep.subr.bf16.mxu0 %v2434_v13  ;;  %2228 = vmatpush3.bf16.msra.mxu1 %v2441_v20  ;;  %v2785_v44 = vld [vmem:[%s2754_s22 + $0x18] sm:$0xff]  ;;  %v2796_v48 = vld [vmem:[%s2754_s22 + $0x28] sm:$0xff]  ;;  %v2110_v49 = vcombine.high %v2790_v46, %v2793_v47  ;;  %v400_v53 = vld [vmem:[%s2754_s22 + $0x40] sm:$0xff]  ;;  %v2109_v55 = vcombine.low %v2790_v46, %v2793_v47 }
  0x15   : > { %2229 = vmatprep.subr.bf16.mxu1 %v2444_v23  ;;  %v2108_v45 = vcombine.high %v2782_v43, %v2785_v44  ;;  %938 = vmatprep.mubr.bf16.mxu1 %v2106_v40  ;;  %v2801_v50 = vld [vmem:[%s2754_s22 + $0x38] sm:$0xff]  ;;  %v2107_v51 = vcombine.low %v2782_v43, %v2785_v44  ;;  %v402_v54 = vld [vmem:[%s2754_s22 + $0x50] sm:$0xff]  ;;  %v2812_v56 = vld [vmem:[%s2754_s22 + $0x48] sm:$0xff] }
  0x16   : > { %v2112_v52 = vcombine.high %v2796_v48, %v2801_v50  ;;  %v2815_v57 = vld [vmem:[%s2754_s22 + $0x58] sm:$0xff]  ;;  %v2114_v58 = vcombine.high %v400_v53, %v402_v54  ;;  %v2111_v59 = vcombine.low %v2796_v48, %v2801_v50  ;;  %v404_v60 = vld [vmem:[%s2754_s22 + $0x60] sm:$0xff]  ;;  %v406_v61 = vld [vmem:[%s2754_s22 + $0x70] sm:$0xff]  ;;  %v2113_v63 = vcombine.low %v400_v53, %v402_v54 }
  0x17   : > { %2264 = vmatpush3.bf16.msra.mxu0 %v2435_v14  ;;  %v2116_v62 = vcombine.high %v2812_v56, %v2815_v57  ;;  %v2824_v0 = vld [vmem:[%s2754_s22 + $0x68] sm:$0xff]  ;;  %v2827_v1 = vld [vmem:[%s2754_s22 + $0x78] sm:$0xff]  ;;  %v2118_v2 = vcombine.high %v404_v60, %v406_v61  ;;  %v2115_v3 = vcombine.low %v2812_v56, %v2815_v57  ;;  %v2117_v6 = vcombine.low %v404_v60, %v406_v61 }
  0x18   : > { %2265 = vmatprep.subr.bf16.mxu0 %v2438_v17  ;;  %2230 = vmatpush3.bf16.msra.mxu1 %v2445_v24  ;;  %v2120_v4 = vcombine.high %v2824_v0, %v2827_v1  ;;  %v2119_v7 = vcombine.low %v2824_v0, %v2827_v1 }
  0x19   : > { %2231 = vmatprep.subr.bf16.mxu1 %v2448_v27 }
  0x1a   : > { %2396 = vmatmul.mubr.msk.bf16.gmra.mrb[4].mxu0 %vm452_vm0, %v390_v12 }
  0x1b   : > { %2266 = vmatpush3.bf16.msra.mxu0 %v2439_v18  ;;  %1003 = vmatprep.mubr.bf16.mxu0 %v2108_v45 }
  0x1c   : > { %2267 = vmatprep.subr.bf16.mxu0 %v2442_v21  ;;  %2232 = vmatpush3.bf16.msra.mxu1 %v2449_v28 }
  0x1d   : > { %2233 = vmatprep.subr.bf16.mxu1 %v2452_v31 }
  0x1f   : > { %2268 = vmatpush3.bf16.msra.mxu0 %v2443_v22 }
  0x20   : > { %2269 = vmatprep.subr.bf16.mxu0 %v2446_v25  ;;  %2234 = vmatpush3.bf16.msra.mxu1 %v2453_v32 }
  0x21   : > { %2235 = vmatprep.subr.bf16.mxu1 %v2456_v35 }
  0x23   : > { %2270 = vmatpush3.bf16.msra.mxu0 %v2447_v26 }
  0x24   : > { %2271 = vmatprep.subr.bf16.mxu0 %v2450_v29  ;;  %2236 = vmatpush3.bf16.msra.mxu1 %v2457_v36 }
  0x27   : > { %2272 = vmatpush3.bf16.msra.mxu0 %v2451_v30  ;;  %939 = vmatmul.mubr.bf16.vlgmr.msra.gmra.mrb[0].mxu1 %v2105_v42 }
  0x28   : > { %2273 = vmatprep.subr.bf16.mxu0 %v2454_v33  ;;  %946 = vmatprep.mubr.bf16.mxu1 %v2110_v49 }
  0x2b   : > { %2274 = vmatpush3.bf16.msra.mxu0 %v2455_v34 }
  0x2c   : > { %2275 = vmatprep.subr.bf16.mxu0 %v2458_v37 }
  0x2f   : > { %2276 = vmatpush3.bf16.msra.mxu0 %v2460_v41  ;;  %947 = vmatmul.mubr.bf16.gmra.mrb[4].mxu1 %v2109_v55 }
  0x30   : > { %954 = vmatprep.mubr.bf16.mxu1 %v2114_v58 }
  0x32   : > { %1004 = vmatmul.mubr.bf16.vlgmr.msra.gmra.mrb[8].mxu0 %v2107_v51 }
  0x33   : > { %1011 = vmatprep.mubr.bf16.mxu0 %v2112_v52 }
  0x37   : > { %955 = vmatmul.mubr.bf16.gmra.mrb[8].mxu1 %v2113_v63 }
  0x38   : > { %962 = vmatprep.mubr.bf16.mxu1 %v2118_v2 }
  0x3a   : > { %1012 = vmatmul.mubr.bf16.gmra.mrb[12].mxu0 %v2111_v59 }
  0x3b   : > { %1019 = vmatprep.mubr.bf16.mxu0 %v2116_v62 }
  0x3f   : > { %963 = vmatmul.mubr.bf16.gmra.mrb[12].mxu1 %v2117_v6 }
  0x40   : > { %1253 = vmatprep.mubr.bf16.mxu1 %v2586_v5 }
  0x42   : > { %1020 = vmatmul.mubr.bf16.gmra.mrb[16].mxu0 %v2115_v3 }
  0x43   : > { %1027 = vmatprep.mubr.bf16.mxu0 %v2120_v4 }
  0x4a   : > { %1028 = vmatmul.mubr.bf16.gmra.mrb[20].mxu0 %v2119_v7 }
  0x4b   : > { %1326 = vmatprep.mubr.bf16.mxu0 %v2586_v5 }
  0xe5   : > { %v2393_v8 = vpop.f32.mrb[0].mxu0 }
  0xe6   : > { %606 = vperm.xlu1 %2421, %v2393_v8   ;;  %v499_v9 = vpop.f32.mrb[1].mxu0 }
  0xe7   : > { %596 = vperm.xlu0 %2420, %v499_v9   ;;  %v2394_v10 = vpop.f32.mrb[2].mxu0 }
  0xe8   : > { %v502_v11 = vpop.f32.mrb[3].mxu0 }
  0xea   : > { %611 = vperm.xlu1 %2421, %v2394_v10  }
  0xeb   : > { %601 = vperm.xlu0 %2420, %v502_v11  }
  0xed   : > { %v2397_v12 = vpop.f32.mrb[4].mxu0 }
  0xee   : > { %v515_v13 = vpop.f32.mrb[5].mxu0 }
  0xef   : > { %616 = vperm.xlu0 %2420, %v515_v13   ;;  %v2398_v14 = vpop.f32.mrb[6].mxu0 }
  0xf0   : > { %v518_v15 = vpop.f32.mrb[7].mxu0 }
  0xf1   : > { %621 = vperm.xlu1 %2421, %v518_v15  }
  0xf3   : > { %626 = vperm.xlu0 %2420, %v2397_v12  }
  0xf5   : > { %631 = vperm.xlu1 %2421, %v2398_v14  }
  0xfa   : > { %v2237_v16 = vpop.f32.mrb[0].mxu1 }
  0xfb   : > { %v2238_v17 = vpop.f32.mrb[1].mxu1 }
  0xfc   : > { %v2239_v18 = vadd.f32 %v2238_v17, %v2237_v16  ;;  %v2240_v19 = vpop.f32.mrb[2].mxu1 }
  0xfd   : > { %v2241_v20 = vpop.f32.mrb[3].mxu1 }
  0xfe   : > { %v2242_v22 = vadd.f32 %v2241_v20, %v2240_v19 }
 0x102   : > { %v2243_v27 = vpop.f32.mrb[4].mxu1 }
 0x103   : > { %v2244_v29 = vpop.f32.mrb[5].mxu1 }
 0x104   : > { %v2245_v30 = vadd.f32 %v2244_v29, %v2243_v27  ;;  %v2246_v31 = vpop.f32.mrb[6].mxu1  ;;  %v408_v29 = vld [vmem:[%s2843_s18] sm:$0xff] }
 0x105   : > { %v2277_v21 = vpop.f32.mrb[8].mxu0  ;;  %v2247_v32 = vpop.f32.mrb[7].mxu1 }
 0x106   : > { %v2278_v23 = vpop.f32.mrb[9].mxu0  ;;  %v2248_v34 = vadd.f32 %v2247_v32, %v2246_v31  ;;  %v410_v32 = vld [vmem:[%s2843_s18 + $0x10] sm:$0xff] }
 0x107   : > { %v2279_v24 = vadd.f32 %v2278_v23, %v2277_v21  ;;  %v2280_v25 = vpop.f32.mrb[10].mxu0 }
 0x108   : > { %v2281_v26 = vpop.f32.mrb[11].mxu0 }
 0x109   : > { %v2282_v28 = vadd.f32 %v2281_v26, %v2280_v25 }
 0x10a   : > { %v2249_v42 = vpop.f32.mrb[8].mxu1 }
 0x10b   : > { %v2250_v45 = vpop.f32.mrb[9].mxu1 }
 0x10c   : > { %v2251_v49 = vadd.f32 %v2250_v45, %v2249_v42  ;;  %v2252_v51 = vpop.f32.mrb[10].mxu1 }
 0x10d   : > { %v2283_v33 = vpop.f32.mrb[12].mxu0  ;;  %v2253_v52 = vpop.f32.mrb[11].mxu1 }
 0x10e   : > { %v2284_v35 = vpop.f32.mrb[13].mxu0  ;;  %v2254_v54 = vadd.f32 %v2253_v52, %v2252_v51  ;;  %v411_v52 = vld [vmem:[%s2843_s18 + $0x18] sm:$0xff] }
 0x10f   : > { %v2285_v36 = vadd.f32 %v2284_v35, %v2283_v33  ;;  %v2286_v37 = vpop.f32.mrb[14].mxu0 }
 0x110   : > { %v2287_v40 = vpop.f32.mrb[15].mxu0 }
 0x111   : > { %v2288_v41 = vadd.f32 %v2287_v40, %v2286_v37  ;;  %v409_v40 = vld [vmem:[%s2843_s18 + $0x8] sm:$0xff] }
 0x112   : > { %v2255_v61 = vpop.f32.mrb[12].mxu1 }
 0x113   : > { %v2256_v63 = vpop.f32.mrb[13].mxu1 }
 0x114   : > { %v2257_v2 = vadd.f32 %v2256_v63, %v2255_v61  ;;  %v2258_v3 = vpop.f32.mrb[14].mxu1  ;;  %v412_v63 = vld [vmem:[%s2843_s18 + $0x20] sm:$0xff] }
 0x115   : > { %v2289_v53 = vpop.f32.mrb[16].mxu0  ;;  %v2259_v4 = vpop.f32.mrb[15].mxu1 }
 0x116   : > { %v2290_v55 = vpop.f32.mrb[17].mxu0  ;;  %v2260_v7 = vadd.f32 %v2259_v4, %v2258_v3 }
 0x117   : > { %v2291_v58 = vadd.f32 %v2290_v55, %v2289_v53  ;;  %v2292_v59 = vpop.f32.mrb[18].mxu0 }
 0x118   : > { %v2293_v60 = vpop.f32.mrb[19].mxu0 }
 0x119   : > { %v2294_v62 = vadd.f32 %v2293_v60, %v2292_v59 }
 0x11d   : > { %v2295_v6 = vpop.f32.mrb[20].mxu0 }
 0x11e   : > { %v2296_v8 = vpop.f32.mrb[21].mxu0 }
 0x11f   : > { %v2297_v9 = vadd.f32 %v2296_v8, %v2295_v6  ;;  %v2298_v10 = vpop.f32.mrb[22].mxu0 }
 0x120   : > { %v2299_v11 = vpop.f32.mrb[23].mxu0 }
 0x121   : > { %v2300_v12 = vadd.f32 %v2299_v11, %v2298_v10 }
 0x165   : > { %v607_v13 = vpop.permute.xlu1 %606 }
 0x166   : > { %v949_v14 = vadd.f32 %v2245_v30, %v607_v13  ;;  %v597_v15 = vpop.permute.xlu0 %596  ;;  %v413_v13 = vld [vmem:[%s2843_s18 + $0x28] sm:$0xff] }
 0x167   : > { %v941_v16 = vadd.f32 %v2239_v18, %v597_v15  ;;  %v414_v15 = vld [vmem:[%s2843_s18 + $0x30] sm:$0xff] }
 0x168   : > { %v1014_v17 = vadd.f32 %v2285_v36, %v949_v14 }
 0x169   : > { %v1006_v19 = vadd.f32 %v2279_v24, %v941_v16  ;;  %v612_v20 = vpop.permute.xlu1 %611 }
 0x16a   : > { %v1046_v21 = vmul.f32 0.2, %v1014_v17  ;;  %v952_v23 = vadd.f32 %v2248_v34, %v612_v20  ;;  %v602_v25 = vpop.permute.xlu0 %601  ;;  %vm1038_vm1 = vcmp.gt.f32.partialorder %v1014_v17, 0.0 }
 0x16b   : > { %v1044_v26 = vmul.f32 0.2, %v1006_v19  ;;  %v944_v27 = vadd.f32 %v2242_v22, %v602_v25  ;;  %vm1036_vm2 = vcmp.gt.f32.partialorder %v1006_v19, 0.0 }
 0x16c   : > { %v1017_v18 = vadd.f32 %v2288_v41, %v952_v23  ;;  %v1054_v33 = vsel %vm1038_vm1, %v1014_v17, %v1046_v21 }
 0x16d   : > { %v1009_v30 = vadd.f32 %v2282_v28, %v944_v27  ;;  %v1052_v31 = vsel %vm1036_vm2, %v1006_v19, %v1044_v26  ;;  %v2852_v28 = vadd.f32 %v1054_v33, %v410_v32  ;;  %v2481_v32 = vld [vmem:[%s3113_s5 + $0xc] ss:$16 sps:$4 sm:$0xff]  }
 0x16e   : > { %v1047_v35 = vmul.f32 0.2, %v1017_v18  ;;  %v617_v36 = vpop.permute.xlu0 %616  ;;  %v2847_v24 = vadd.f32 %v1052_v31, %v408_v29  ;;  %vm1039_vm4 = vcmp.gt.f32.partialorder %v1017_v18, 0.0  ;;  %v2479_v31 = vld [vmem:[%s3113_s5 + $0x8] ss:$16 sps:$4 sm:$0xff]   ;;  %1294 = vmatprep.subr.bf16.mxu0 %v2481_v32 }
 0x16f   : > { %v1045_v34 = vmul.f32 0.2, %v1009_v30  ;;  %v957_v37 = vadd.f32 %v2251_v49, %v617_v36  ;;  %vm1037_vm5 = vcmp.gt.f32.partialorder %v1009_v30, 0.0  ;;  %1295 = vmatpush1.bf16.msra.mxu0 %v2479_v31 }
 0x170   : > { %v622_v22 = vpop.permute.xlu1 %621  ;;  %v1069_v41 = vsel %vm1068_vm3, %v2847_v24, -inf  ;;  %v1055_v53 = vsel %vm1039_vm4, %v1017_v18, %v1047_v35  ;;  %v2476_v18 = vld [vmem:[%s3113_s5] ss:$16 sps:$4 sm:$0xff]  }
 0x171   : > { %v1022_v42 = vadd.f32 %v2291_v58, %v957_v37  ;;  %v960_v45 = vadd.f32 %v2254_v54, %v622_v22  ;;  %1070 = vmax.xlane.f32.xlu0 %v1069_v41  ;;  %v1053_v51 = vsel %vm1037_vm5, %v1009_v30, %v1045_v34  ;;  %v1075_v58 = vsel %vm1068_vm3, %v2852_v28, -inf  ;;  %v2478_v30 = vld [vmem:[%s3113_s5 + $0x4] ss:$16 sps:$4 sm:$0xff]  }
 0x172   : > { %v627_v55 = vpop.permute.xlu0 %626  ;;  %v1061_v59 = vadd.f32 %v1053_v51, %v409_v40  ;;  %v1063_v54 = vadd.f32 %v1055_v53, %v411_v52  ;;  %1221 = vmatprep.subr.bf16.mxu1 %v2478_v30 }
 0x173   : > { %v1048_v60 = vmul.f32 0.2, %v1022_v42  ;;  %v1025_v49 = vadd.f32 %v2294_v62, %v960_v45  ;;  %v965_v61 = vadd.f32 %v2257_v2, %v627_v55  ;;  %vm1040_vm6 = vcmp.gt.f32.partialorder %v1022_v42, 0.0  ;;  %1222 = vmatpush1.bf16.msra.mxu1 %v2476_v18 }
 0x174   : > { %v632_v3 = vpop.permute.xlu1 %631  ;;  %v1072_v4 = vsel %vm1068_vm3, %v1061_v59, -inf  ;;  %v1078_v19 = vsel %vm1068_vm3, %v1063_v54, -inf }
 0x175   : > { %v1049_v6 = vmul.f32 0.2, %v1025_v49  ;;  %v1030_v8 = vadd.f32 %v2297_v9, %v965_v61  ;;  %v968_v10 = vadd.f32 %v2260_v7, %v632_v3  ;;  %1073 = vmax.xlane.f32.xlu1 %v1072_v4  ;;  %1076 = vmax.xlane.f32.xlu0 %v1075_v58  ;;  %v1056_v11 = vsel %vm1040_vm6, %v1022_v42, %v1048_v60  ;;  %v415_v9 = vld [vmem:[%s2843_s18 + $0x38] sm:$0xff] }
 0x176   : > { %v1064_v62 = vadd.f32 %v1056_v11, %v412_v63  ;;  %vm1041_vm7 = vcmp.gt.f32.partialorder %v1025_v49, 0.0 }
 0x177   : > { %v1050_v2 = vmul.f32 0.2, %v1030_v8  ;;  %v1033_v14 = vadd.f32 %v2300_v12, %v968_v10  ;;  %vm1042_vm8 = vcmp.gt.f32.partialorder %v1030_v8, 0.0  ;;  %v1057_v16 = vsel %vm1041_vm7, %v1025_v49, %v1049_v6 }
 0x178   : > { %v1081_v17 = vsel %vm1068_vm3, %v1064_v62, -inf  ;;  %v1065_v20 = vadd.f32 %v1057_v16, %v413_v13 }
 0x179   : > { %v1051_v21 = vmul.f32 0.2, %v1033_v14  ;;  %1082 = vmax.xlane.f32.xlu1 %v1081_v17  ;;  %1079 = vmax.xlane.f32.xlu0 %v1078_v19  ;;  %v1058_v7 = vsel %vm1042_vm8, %v1030_v8, %v1050_v2  ;;  %vm1043_vm9 = vcmp.gt.f32.partialorder %v1033_v14, 0.0 }
 0x17a   : > { %v1066_v23 = vadd.f32 %v1058_v7, %v414_v15  ;;  %v1084_v12 = vsel %vm1068_vm3, %v1065_v20, -inf }
 0x17b   : > { %v1059_v25 = vsel %vm1043_vm9, %v1033_v14, %v1051_v21 }
 0x17c   : > { %v1087_v26 = vsel %vm1068_vm3, %v1066_v23, -inf  ;;  %v1067_v27 = vadd.f32 %v1059_v25, %v415_v9  ;;  %v2482_v9 = vld [vmem:[%s3114_s6 + $0x40] sm:$0xff]  }
 0x17d   : > { %1088 = vmax.xlane.f32.xlu1 %v1087_v26  ;;  %1085 = vmax.xlane.f32.xlu0 %v1084_v12 }
 0x17e   : > { %v1090_v29 = vsel %vm1068_vm3, %v1067_v27, -inf  ;;  %2301 = vmatprep.subr.bf16.mxu1 %v2482_v9 }
 0x181   : > { %1091 = vmax.xlane.f32.xlu0 %v1090_v29 }
 0x1fe   : > { %v1071_v33 = vpop.xlane.xlu0 %1070 }
 0x1ff   : > { %v1093_v35 = vsub.f32 %v2847_v24, %v1071_v33 }
 0x201   : > { %v1101_v36 = vmul.f32 1.442695, %v1093_v35 }
 0x202   : > { %v1074_v34 = vpop.xlane.xlu1 %1073  ;;  %v1077_v37 = vpop.xlane.xlu0 %1076 }
 0x203   : > { %2520 = vpow2.f32 %v1101_v36  ;;  %v1094_v40 = vsub.f32 %v1061_v59, %v1074_v34  ;;  %v1095_v22 = vsub.f32 %v2852_v28, %v1077_v37 }
 0x205   : > { %v1103_v41 = vmul.f32 1.442695, %v1094_v40  ;;  %v1105_v42 = vmul.f32 1.442695, %v1095_v22 }
 0x206   : > { %v1083_v45 = vpop.xlane.xlu1 %1082  ;;  %v1080_v51 = vpop.xlane.xlu0 %1079 }
 0x207   : > { %2522 = vpow2.f32 %v1103_v41  ;;  %v1097_v52 = vsub.f32 %v1064_v62, %v1083_v45  ;;  %v1096_v53 = vsub.f32 %v1063_v54, %v1080_v51 }
 0x208   : > { %2524 = vpow2.f32 %v1105_v42 }
 0x209   : > { %v1109_v55 = vmul.f32 1.442695, %v1097_v52  ;;  %v1107_v60 = vmul.f32 1.442695, %v1096_v53 }
 0x20a   : > { %v1089_v49 = vpop.xlane.xlu1 %1088  ;;  %v1086_v61 = vpop.xlane.xlu0 %1085 }
 0x20b   : > { %2526 = vpow2.f32 %v1109_v55  ;;  %v1099_v24 = vsub.f32 %v1066_v23, %v1089_v49  ;;  %v1098_v63 = vsub.f32 %v1065_v20, %v1086_v61  ;;  %v2484_v23 = vld [vmem:[%s3114_s6 + $0xc0] sm:$0xff]  }
 0x20c   : > { %2528 = vpow2.f32 %v1107_v60  ;;  %2341 = vmatprep.subr.bf16.mxu0 %v2484_v23 }
 0x20d   : > { %v2881_v3 = vpop.eup %2520  ;;  %v1113_v59 = vmul.f32 1.442695, %v1099_v24  ;;  %v1111_v28 = vmul.f32 1.442695, %v1098_v63  ;;  %v2483_v24 = vld [vmem:[%s3114_s6] sm:$0xff]  }
 0x20e   : > { %v1092_v4 = vpop.xlane.xlu0 %1091  ;;  %v1117_v58 = vsel %vm1068_vm3, %v2881_v3, 0.0  ;;  %v2485_v63 = vld [vmem:[%s3114_s6 + $0x80] sm:$0xff]  }
 0x20f   : > { %2530 = vpow2.f32 %v1113_v59  ;;  %v1100_v6 = vsub.f32 %v1067_v27, %v1092_v4  ;;  %1118 = vadd.xlane.f32.xlu1 %v1117_v58  ;;  %v2486_v4 = vld [vmem:[%s3114_s6 + $0x48] sm:$0xff]  }
 0x210   : > { %2532 = vpow2.f32 %v1111_v28 }
 0x211   : > { %v2523_v54 = vpop.eup %2522  ;;  %v1115_v8 = vmul.f32 1.442695, %v1100_v6 }
 0x212   : > { %v2885_v10 = vpop.eup %2524  ;;  %v1120_v11 = vsel %vm1068_vm3, %v2523_v54, 0.0 }
 0x213   : > { %2534 = vpow2.f32 %v1115_v8  ;;  %1121 = vadd.xlane.f32.xlu0 %v1120_v11  ;;  %v1123_v13 = vsel %vm1068_vm3, %v2885_v10, 0.0 }
 0x214   : > { %1124 = vadd.xlane.f32.xlu1 %v1123_v13  ;;  %v2487_v13 = vld [vmem:[%s3114_s6 + $0x8] sm:$0xff]  }
 0x215   : > { %v2890_v62 = vpop.eup %2526 }
 0x216   : > { %v2892_v2 = vpop.eup %2528  ;;  %v1129_v14 = vsel %vm1068_vm3, %v2890_v62, 0.0 }
 0x217   : > { %v1126_v15 = vsel %vm1068_vm3, %v2892_v2, 0.0 }
 0x218   : > { %1130 = vadd.xlane.f32.xlu1 %v1129_v14  ;;  %1127 = vadd.xlane.f32.xlu0 %v1126_v15  ;;  %v2489_v14 = vld [vmem:[%s3114_s6 + $0x88] sm:$0xff]  }
 0x219   : > { %v2898_v16 = vpop.eup %2530 }
 0x21a   : > { %v2900_v17 = vpop.eup %2532  ;;  %v1135_v19 = vsel %vm1068_vm3, %v2898_v16, 0.0 }
 0x21b   : > { %v1132_v20 = vsel %vm1068_vm3, %v2900_v17, 0.0 }
 0x21c   : > { %1136 = vadd.xlane.f32.xlu1 %v1135_v19  ;;  %1133 = vadd.xlane.f32.xlu0 %v1132_v20  ;;  %v2490_v19 = vld [vmem:[%s3114_s6 + $0x50] sm:$0xff]  }
 0x21d   : > { %v2906_v21 = vpop.eup %2534 }
 0x21e   : > { %v1138_v7 = vsel %vm1068_vm3, %v2906_v21, 0.0 }
 0x220   : > { %1139 = vadd.xlane.f32.xlu0 %v1138_v7 }
 0x29c   : > { %v1119_v25 = vpop.xlane.xlu1 %1118 }
 0x29d   : > { %2536 = vrcp.f32 %v1119_v25 }
 0x2a0   : > { %v1122_v26 = vpop.xlane.xlu0 %1121 }
 0x2a1   : > { %v1125_v12 = vpop.xlane.xlu1 %1124  ;;  %2538 = vrcp.f32 %v1122_v26 }
 0x2a2   : > { %2540 = vrcp.f32 %v1125_v12 }
 0x2a5   : > { %v1128_v27 = vpop.xlane.xlu0 %1127  ;;  %v1131_v29 = vpop.xlane.xlu1 %1130 }
 0x2a6   : > { %2542 = vrcp.f32 %v1128_v27 }
 0x2a7   : > { %v2537_v18 = vpop.eup %2536  ;;  %2544 = vrcp.f32 %v1131_v29 }
 0x2a8   : > { %v1149_v30 = vmul.f32 %v2537_v18, %v1119_v25 }
 0x2a9   : > { %v1134_v31 = vpop.xlane.xlu0 %1133  ;;  %v1137_v41 = vpop.xlane.xlu1 %1136 }
 0x2aa   : > { %v1157_v32 = vsub.f32 2.0, %v1149_v30  ;;  %2546 = vrcp.f32 %v1134_v31 }
 0x2ab   : > { %v2539_v33 = vpop.eup %2538 }
 0x2ac   : > { %v2541_v35 = vpop.eup %2540  ;;  %v1150_v36 = vmul.f32 %v2539_v33, %v1122_v26  ;;  %v1165_v40 = vmul.f32 %v2537_v18, %v1157_v32 }
 0x2ad   : > { %v1151_v34 = vmul.f32 %v2541_v35, %v1125_v12  ;;  %v1140_v37 = vpop.xlane.xlu0 %1139  ;;  %v2491_v12 = vld [vmem:[%s3114_s6 + $0x10] sm:$0xff]  }
 0x2ae   : > { %v1158_v22 = vsub.f32 2.0, %v1150_v36  ;;  %2548 = vrcp.f32 %v1140_v37  ;;  %v1173_v52 = vmul.f32 %v2881_v3, %v1165_v40  ;;  %v2488_v3 = vld [vmem:[%s3114_s6 + $0xc8] sm:$0xff]   ;;  %v2498_v36 = vld [vmem:[%s3114_s6 + $0x60] sm:$0xff]  }
 0x2af   : > { %v1159_v51 = vsub.f32 2.0, %v1151_v34  ;;  %2550 = vrcp.f32 %v1137_v41 }
 0x2b0   : > { %v1166_v42 = vmul.f32 %v2539_v33, %v1158_v22  ;;  %v2543_v45 = vpop.eup %2542  ;;  %v2495_v33 = vld [vmem:[%s3114_s6 + $0x18] sm:$0xff]  }
 0x2b1   : > { %v1152_v55 = vmul.f32 %v2543_v45, %v1128_v27  ;;  %v2545_v60 = vpop.eup %2544  ;;  %v1167_v28 = vmul.f32 %v2541_v35, %v1159_v51  ;;  %v2493_v27 = vld [vmem:[%s3114_s6 + $0x90] sm:$0xff]   ;;  %v2497_v35 = vld [vmem:[%s3114_s6 + $0x98] sm:$0xff]  }
 0x2b2   : > { %v1174_v53 = vmul.f32 %v2523_v54, %v1166_v42  ;;  %v1153_v58 = vmul.f32 %v2545_v60, %v1131_v29  ;;  %v2496_v29 = vld [vmem:[%s3114_s6 + $0xd8] sm:$0xff]   ;;  %v2501_v42 = vld [vmem:[%s3114_s6 + $0xa0] sm:$0xff]  }
 0x2b3   : > { %v1160_v61 = vsub.f32 2.0, %v1152_v55  ;;  %v1175_v20 = vmul.f32 %v2885_v10, %v1167_v28  ;;  %v2494_v10 = vld [vmem:[%s3114_s6 + $0x58] sm:$0xff]   ;;  %v2505_v55 = vld [vmem:[%s3114_s6 + $0xa8] sm:$0xff]  }
 0x2b4   : > { %v1181_v49 = vpack.c.bf16 %v1174_v53, %v1173_v52  ;;  %v2547_v59 = vpop.eup %2546  ;;  %v1161_v7 = vsub.f32 2.0, %v1153_v58  ;;  %v2503_v53 = vld [vmem:[%s3114_s6 + $0x28] sm:$0xff]   ;;  %v2513_v28 = vld [vmem:[%s3114_s6 + $0xb8] sm:$0xff]   ;;  %v1371_v58 = vunpack.c.l.bf16 %v2772_v39 }
 0x2b5   : > { %v1168_v6 = vmul.f32 %v2543_v45, %v1160_v61  ;;  %v1154_v54 = vmul.f32 %v2547_v59, %v1134_v31  ;;  %v2502_v45 = vld [vmem:[%s3114_s6 + $0x68] sm:$0xff]   ;;  %v2507_v61 = vld [vmem:[%s3114_s6 + $0x30] sm:$0xff]  }
 0x2b6   : > { %2157 = vmatmul.mubr.msk.bf16.vlgmr.msra.gmra.mrb[16].mxu1 %vm1068_vm3, %v1181_v49  ;;  %2161 = vmatmul.mubr.msk.bf16.vlgmr.msra.gmra.mrb[24].mxu0 %vm1068_vm3, %v1181_v49  ;;  %v1169_v18 = vmul.f32 %v2545_v60, %v1161_v7 }
 0x2b7   : > { %1263 = vmatprep.mubr.bf16.mxu1 %v2586_v5  ;;  %1336 = vmatprep.mubr.bf16.mxu0 %v2586_v5  ;;  %v1176_v8 = vmul.f32 %v2892_v2, %v1168_v6  ;;  %v1162_v11 = vsub.f32 2.0, %v1154_v54  ;;  %v2492_v2 = vld [vmem:[%s3114_s6 + $0xd0] sm:$0xff]   ;;  %v1373_v6 = vunpack.c.l.bf16 %v2785_v44 }
 0x2b8   : > { %2302 = vmatpush3.bf16.msra.mxu1 %v2483_v24  ;;  %2342 = vmatpush3.bf16.msra.mxu0 %v2485_v63  ;;  %v2549_v15 = vpop.eup %2548  ;;  %v1177_v34 = vmul.f32 %v2890_v62, %v1169_v18  ;;  %v2504_v62 = vld [vmem:[%s3114_s6 + $0xe8] sm:$0xff]   ;;  %v2510_v24 = vld [vmem:[%s3114_s6 + $0x78] sm:$0xff]  }
 0x2b9   : > { %2303 = vmatprep.subr.bf16.mxu1 %v2486_v4  ;;  %2343 = vmatprep.subr.bf16.mxu0 %v2488_v3  ;;  %v2551_v9 = vpop.eup %2550  ;;  %v1170_v23 = vmul.f32 %v2547_v59, %v1162_v11  ;;  %v1156_v25 = vmul.f32 %v2549_v15, %v1140_v37  ;;  %v1182_v26 = vpack.c.bf16 %v1176_v8, %v1175_v20  ;;  %v2512_v63 = vld [vmem:[%s3114_s6 + $0xf8] sm:$0xff]   ;;  %v1367_v4 = vunpack.c.l.bf16 %v2769_v38 }
 0x2ba   : > { %v1155_v30 = vmul.f32 %v2551_v9, %v1137_v41  ;;  %v2499_v41 = vld [vmem:[%s3114_s6 + $0x20] sm:$0xff]   ;;  %v2511_v59 = vld [vmem:[%s3114_s6 + $0x38] sm:$0xff]   ;;  %v1369_v3 = vunpack.c.l.bf16 %v2782_v43  ;;  %v1368_v11 = vunpack.c.h.bf16 %v2769_v38 }
 0x2bb   : > { %v1178_v31 = vmul.f32 %v2900_v17, %v1170_v23  ;;  %v1164_v32 = vsub.f32 2.0, %v1156_v25  ;;  %v2500_v17 = vld [vmem:[%s3114_s6 + $0xe0] sm:$0xff]  }
 0x2bc   : > { %2304 = vmatpush3.bf16.msra.mxu1 %v2487_v13  ;;  %2344 = vmatpush3.bf16.msra.mxu0 %v2489_v14  ;;  %v1163_v37 = vsub.f32 2.0, %v1155_v30  ;;  %v1370_v13 = vunpack.c.h.bf16 %v2782_v43  ;;  %v1372_v14 = vunpack.c.h.bf16 %v2772_v39 }
 0x2bd   : > { %2305 = vmatprep.subr.bf16.mxu1 %v2490_v19  ;;  %2345 = vmatprep.subr.bf16.mxu0 %v2492_v2  ;;  %v1172_v40 = vmul.f32 %v2549_v15, %v1164_v32  ;;  %v1183_v22 = vpack.c.bf16 %v1178_v31, %v1177_v34  ;;  %v1374_v15 = vunpack.c.h.bf16 %v2785_v44  ;;  %v1375_v44 = vunpack.c.l.bf16 %v2790_v46 }
 0x2be   : > { %2158 = vmatmul.mubr.msk.bf16.gmra.mrb[20].mxu1 %vm1068_vm3, %v1182_v26  ;;  %2162 = vmatmul.mubr.msk.bf16.gmra.mrb[28].mxu0 %vm1068_vm3, %v1182_v26  ;;  %v1171_v51 = vmul.f32 %v2551_v9, %v1163_v37  ;;  %v1377_v32 = vunpack.c.l.bf16 %v2796_v48  ;;  %v1376_v34 = vunpack.c.h.bf16 %v2790_v46  ;;  %v1378_v37 = vunpack.c.h.bf16 %v2796_v48 }
 0x2bf   : > { %1273 = vmatprep.mubr.bf16.mxu1 %v2586_v5  ;;  %1346 = vmatprep.mubr.bf16.mxu0 %v2586_v5  ;;  %v1180_v52 = vmul.f32 %v2906_v21, %v1172_v40  ;;  %v2508_v21 = vld [vmem:[%s3114_s6 + $0xf0] sm:$0xff]   ;;  %v1380_v40 = vunpack.c.h.bf16 %v2793_v47 }
 0x2c0   : > { %2306 = vmatpush3.bf16.msra.mxu1 %v2491_v12  ;;  %2346 = vmatpush3.bf16.msra.mxu0 %v2493_v27  ;;  %v1179_v60 = vmul.f32 %v2898_v16, %v1171_v51  ;;  %v2509_v16 = vld [vmem:[%s3114_s6 + $0xb0] sm:$0xff]  }
 0x2c1   : > { %2307 = vmatprep.subr.bf16.mxu1 %v2494_v10  ;;  %2347 = vmatprep.subr.bf16.mxu0 %v2496_v29 }
 0x2c2   : > { %v1184_v49 = vpack.c.bf16 %v1180_v52, %v1179_v60 }
 0x2c4   : > { %2308 = vmatpush3.bf16.msra.mxu1 %v2495_v33  ;;  %2348 = vmatpush3.bf16.msra.mxu0 %v2497_v35  ;;  %v1379_v33 = vunpack.c.l.bf16 %v2793_v47  ;;  %v1381_v35 = vunpack.c.l.bf16 %v2801_v50 }
 0x2c5   : > { %2309 = vmatprep.subr.bf16.mxu1 %v2498_v36  ;;  %2349 = vmatprep.subr.bf16.mxu0 %v2500_v17 }
 0x2c6   : > { %2159 = vmatmul.mubr.msk.bf16.gmra.mrb[24].mxu1 %vm1068_vm3, %v1183_v22  ;;  %2163 = vmatmul.mubr.msk.bf16.gmra.mrb[32].mxu0 %vm1068_vm3, %v1183_v22  ;;  %v1382_v22 = vunpack.c.h.bf16 %v2801_v50 }
 0x2c7   : > { %1283 = vmatprep.mubr.bf16.mxu1 %v2586_v5  ;;  %1356 = vmatprep.mubr.bf16.mxu0 %v2586_v5  ;;  %v2506_v5 = vld [vmem:[%s3114_s6 + $0x70] sm:$0xff]  }
 0x2c8   : > { %2310 = vmatpush3.bf16.msra.mxu1 %v2499_v41  ;;  %2350 = vmatpush3.bf16.msra.mxu0 %v2501_v42 }
 0x2c9   : > { %2311 = vmatprep.subr.bf16.mxu1 %v2502_v45  ;;  %2351 = vmatprep.subr.bf16.mxu0 %v2504_v62 }
 0x2cc   : > { %2312 = vmatpush3.bf16.msra.mxu1 %v2503_v53  ;;  %2352 = vmatpush3.bf16.msra.mxu0 %v2505_v55 }
 0x2cd   : > { %2313 = vmatprep.subr.bf16.mxu1 %v2506_v5  ;;  %2353 = vmatprep.subr.bf16.mxu0 %v2508_v21 }
 0x2ce   : > { %2160 = vmatmul.mubr.msk.bf16.gmra.mrb[28].mxu1 %vm1068_vm3, %v1184_v49  ;;  %2164 = vmatmul.mubr.msk.bf16.gmra.mrb[36].mxu0 %vm1068_vm3, %v1184_v49 }
 0x2d0   : > { %2314 = vmatpush3.bf16.msra.mxu1 %v2507_v61  ;;  %2354 = vmatpush3.bf16.msra.mxu0 %v2509_v16 }
 0x2d1   : > { %2315 = vmatprep.subr.bf16.mxu1 %v2510_v24  ;;  %2355 = vmatprep.subr.bf16.mxu0 %v2512_v63  ;;  %v2568_v24 = vld [vmem:[%s2754_s22 + $0x40] sm:$0xff] }
 0x2d2   : > { %v1383_v63 = vunpack.c.l.bf16 %v2568_v24 }
 0x2d4   : > { %2316 = vmatpush3.bf16.msra.mxu1 %v2511_v59  ;;  %2356 = vmatpush3.bf16.msra.mxu0 %v2513_v28  ;;  %v1385_v59 = vunpack.c.l.bf16 %v2812_v56  ;;  %v2569_v28 = vld [vmem:[%s2754_s22 + $0x50] sm:$0xff] }
 0x389   : > { %v1255_v54 = vpop.f32.mrb[16].mxu1  ;;  %v1328_v8 = vpop.f32.mrb[24].mxu0 }
 0x38a   : > { %v1257_v19 = vpop.f32.mrb[17].mxu1  ;;  %v1330_v2 = vpop.f32.mrb[25].mxu0  ;;  %v1399_v9 = vmul.f32 %v1367_v4, %v1255_v54  ;;  %v1401_v23 = vmul.f32 %v1369_v3, %v1328_v8  ;;  %v1387_v4 = vunpack.c.l.bf16 %v2569_v28  ;;  %v1389_v3 = vunpack.c.l.bf16 %v2815_v57  ;;  %v2570_v8 = vld [vmem:[%s2754_s22 + $0x48] sm:$0xff] }
 0x38b   : > { %v1259_v20 = vpop.f32.mrb[18].mxu1  ;;  %v1332_v7 = vpop.f32.mrb[26].mxu0  ;;  %v1400_v10 = vmul.f32 %v1368_v11, %v1257_v19  ;;  %v1402_v29 = vmul.f32 %v1370_v13, %v1330_v2  ;;  %v1384_v54 = vunpack.c.h.bf16 %v2568_v24  ;;  %v1386_v11 = vunpack.c.h.bf16 %v2570_v8  ;;  %v2574_v24 = vld [vmem:[%s2667_s25] sm:$0xff]  }
 0x38c   : > { %v1403_v25 = vmul.f32 %v1371_v58, %v1259_v20  ;;  %v1405_v26 = vmul.f32 %v1373_v6, %v1332_v7  ;;  %v1261_v12 = vpop.f32.mrb[19].mxu1  ;;  %v1334_v27 = vpop.f32.mrb[27].mxu0  ;;  %v1388_v13 = vunpack.c.h.bf16 %v2569_v28 }
 0x38d   : > { %v1404_v18 = vmul.f32 %v1372_v14, %v1261_v12  ;;  %v1406_v38 = vmul.f32 %v1374_v15, %v1334_v27  ;;  %v2571_v14 = vld [vmem:[%s2754_s22 + $0x58] sm:$0xff] }
 0x38e   : > { %v1431_v30 = vpack.c.bf16 %v1403_v25, %v1399_v9  ;;  %v1433_v43 = vpack.c.bf16 %v1405_v26, %v1401_v23  ;;  %v1390_v15 = vunpack.c.h.bf16 %v2571_v14 }
 0x38f   : > { %v1432_v31 = vpack.c.bf16 %v1404_v18, %v1400_v10  ;;  %v1434_v39 = vpack.c.bf16 %v1406_v38, %v1402_v29 }
 0x391   : > { %v1265_v36 = vpop.f32.mrb[20].mxu1  ;;  %v1338_v17 = vpop.f32.mrb[28].mxu0  ;;  %1743 = vmatprep.mubr.bf16.mxu1 %v1432_v31  ;;  %1808 = vmatprep.mubr.bf16.mxu0 %v1434_v39  ;;  %v2572_v31 = vld [vmem:[%s2754_s22 + $0x60] sm:$0xff] }
 0x392   : > { %v1267_v41 = vpop.f32.mrb[21].mxu1  ;;  %v1340_v42 = vpop.f32.mrb[29].mxu0  ;;  %1744 = vmatmul.mubr.bf16.vlgmr.msra.gmra.mrb[32].mxu1 %v1431_v30  ;;  %1809 = vmatmul.mubr.bf16.vlgmr.msra.gmra.mrb[40].mxu0 %v1433_v43  ;;  %v1407_v51 = vmul.f32 %v1375_v44, %v1265_v36  ;;  %v1409_v52 = vmul.f32 %v1377_v32, %v1338_v17  ;;  %v1391_v39 = vunpack.c.l.bf16 %v2572_v31  ;;  %v1393_v44 = vunpack.c.l.bf16 %v2824_v0  ;;  %v2573_v32 = vld [vmem:[%s2754_s22 + $0x70] sm:$0xff] }
 0x393   : > { %v1269_v45 = vpop.f32.mrb[22].mxu1  ;;  %v1342_v62 = vpop.f32.mrb[30].mxu0  ;;  %v1408_v49 = vmul.f32 %v1376_v34, %v1267_v41  ;;  %v1410_v48 = vmul.f32 %v1378_v37, %v1340_v42  ;;  %v1392_v34 = vunpack.c.h.bf16 %v2572_v31  ;;  %v1394_v37 = vunpack.c.h.bf16 %v2824_v0 }
 0x394   : > { %v1411_v53 = vmul.f32 %v1379_v33, %v1269_v45  ;;  %v1413_v55 = vmul.f32 %v1381_v35, %v1342_v62  ;;  %v1271_v60 = vpop.f32.mrb[23].mxu1  ;;  %v1344_v46 = vpop.f32.mrb[31].mxu0  ;;  %v1395_v33 = vunpack.c.l.bf16 %v2573_v32  ;;  %v1397_v35 = vunpack.c.l.bf16 %v2827_v1 }
 0x395   : > { %v1412_v5 = vmul.f32 %v1380_v40, %v1271_v60  ;;  %v1414_v47 = vmul.f32 %v1382_v22, %v1344_v46  ;;  %v1396_v40 = vunpack.c.h.bf16 %v2573_v32  ;;  %v1398_v22 = vunpack.c.h.bf16 %v2827_v1 }
 0x396   : > { %v1435_v50 = vpack.c.bf16 %v1411_v53, %v1407_v51  ;;  %v1437_v21 = vpack.c.bf16 %v1413_v55, %v1409_v52 }
 0x397   : > { %v1436_v61 = vpack.c.bf16 %v1412_v5, %v1408_v49  ;;  %v1438_v16 = vpack.c.bf16 %v1414_v47, %v1410_v48 }
 0x399   : > { %v1275_v58 = vpop.f32.mrb[24].mxu1  ;;  %v1348_v6 = vpop.f32.mrb[32].mxu0  ;;  %1751 = vmatprep.mubr.bf16.mxu1 %v1436_v61  ;;  %1816 = vmatprep.mubr.bf16.mxu0 %v1438_v16  ;;  %v2514_v61 = vld [vmem:[%s3115_s7] sm:$0xff]   ;;  %v2515_v16 = vld [vmem:[%s3115_s7 + $0x8] sm:$0xff]  }
 0x39a   : > { %v1277_v19 = vpop.f32.mrb[25].mxu1  ;;  %v1350_v2 = vpop.f32.mrb[33].mxu0  ;;  %1752 = vmatmul.mubr.bf16.gmra.mrb[36].mxu1 %v1435_v50  ;;  %1817 = vmatmul.mubr.bf16.gmra.mrb[44].mxu0 %v1437_v21  ;;  %v1415_v7 = vmul.f32 %v1383_v63, %v1275_v58  ;;  %v1417_v9 = vmul.f32 %v1385_v59, %v1348_v6  ;;  %v1511_v63 = vunpack.c.l.bf16 %v2574_v24  ;;  %v1512_v58 = vunpack.c.h.bf16 %v2574_v24 }
 0x39b   : > { %v1279_v20 = vpop.f32.mrb[26].mxu1  ;;  %v1352_v56 = vpop.f32.mrb[34].mxu0  ;;  %v1416_v12 = vmul.f32 %v1384_v54, %v1277_v19  ;;  %v1418_v27 = vmul.f32 %v1386_v11, %v1350_v2  ;;  %2399 = vmatprep.subr.bf16.mxu1 %v2514_v61 }
 0x39c   : > { %v1419_v57 = vmul.f32 %v1387_v4, %v1279_v20  ;;  %v1421_v23 = vmul.f32 %v1389_v3, %v1352_v56  ;;  %v1281_v25 = vpop.f32.mrb[27].mxu1  ;;  %v1354_v26 = vpop.f32.mrb[35].mxu0  ;;  %2400 = vmatpush3.bf16.msra.mxu1 %v2514_v61 }
 0x39d   : > { %v1420_v10 = vmul.f32 %v1388_v13, %v1281_v25  ;;  %v1422_v29 = vmul.f32 %v1390_v15, %v1354_v26  ;;  %2401 = vmatprep.subr.bf16.mxu1 %v2515_v16  ;;  %v2575_v25 = vld [vmem:[%s2667_s25 + $0x8] sm:$0xff]  }
 0x39e   : > { %v1439_v18 = vpack.c.bf16 %v1419_v57, %v1415_v7  ;;  %v1441_v38 = vpack.c.bf16 %v1421_v23, %v1417_v9  ;;  %v1513_v26 = vunpack.c.l.bf16 %v2575_v25 }
 0x39f   : > { %v1440_v30 = vpack.c.bf16 %v1420_v10, %v1416_v12  ;;  %v1442_v43 = vpack.c.bf16 %v1422_v29, %v1418_v27 }
 0x3a0   : > { %2402 = vmatpush3.bf16.msra.mxu1 %v2515_v16 }
 0x3a1   : > { %v1285_v36 = vpop.f32.mrb[28].mxu1  ;;  %v1358_v17 = vpop.f32.mrb[36].mxu0  ;;  %1759 = vmatprep.mubr.bf16.mxu1 %v1440_v30  ;;  %1824 = vmatprep.mubr.bf16.mxu0 %v1442_v43  ;;  %v1514_v43 = vunpack.c.h.bf16 %v2575_v25 }
 0x3a2   : > { %v1287_v41 = vpop.f32.mrb[29].mxu1  ;;  %v1360_v42 = vpop.f32.mrb[37].mxu0  ;;  %1760 = vmatmul.mubr.bf16.gmra.mrb[40].mxu1 %v1439_v18  ;;  %1825 = vmatmul.mubr.bf16.gmra.mrb[48].mxu0 %v1441_v38  ;;  %v1423_v51 = vmul.f32 %v1391_v39, %v1285_v36  ;;  %v1425_v52 = vmul.f32 %v1393_v44, %v1358_v17 }
 0x3a3   : > { %v1289_v45 = vpop.f32.mrb[30].mxu1  ;;  %v1362_v62 = vpop.f32.mrb[38].mxu0  ;;  %v1424_v49 = vmul.f32 %v1392_v34, %v1287_v41  ;;  %v1426_v48 = vmul.f32 %v1394_v37, %v1360_v42  ;;  %v2576_v42 = vld [vmem:[%s2667_s25 + $0x10] sm:$0xff]  }
 0x3a4   : > { %v1427_v53 = vmul.f32 %v1395_v33, %v1289_v45  ;;  %v1429_v55 = vmul.f32 %v1397_v35, %v1362_v62  ;;  %v1291_v60 = vpop.f32.mrb[31].mxu1  ;;  %v1364_v46 = vpop.f32.mrb[39].mxu0  ;;  %v1515_v45 = vunpack.c.l.bf16 %v2576_v42 }
 0x3a5   : > { %v1428_v5 = vmul.f32 %v1396_v40, %v1291_v60  ;;  %v1430_v0 = vmul.f32 %v1398_v22, %v1364_v46 }
 0x3a6   : > { %v1443_v47 = vpack.c.bf16 %v1427_v53, %v1423_v51  ;;  %v1445_v50 = vpack.c.bf16 %v1429_v55, %v1425_v52 }
 0x3a7   : > { %v1444_v1 = vpack.c.bf16 %v1428_v5, %v1424_v49  ;;  %v1446_v21 = vpack.c.bf16 %v1430_v0, %v1426_v48  ;;  %v1516_v49 = vunpack.c.h.bf16 %v2576_v42 }
 0x3a9   : > { %1767 = vmatprep.mubr.bf16.mxu1 %v1444_v1  ;;  %1832 = vmatprep.mubr.bf16.mxu0 %v1446_v21 }
 0x3aa   : > { %1768 = vmatmul.mubr.bf16.gmra.mrb[44].mxu1 %v1443_v47  ;;  %1833 = vmatmul.mubr.bf16.gmra.mrb[52].mxu0 %v1445_v50 }
 0x465   : > { %v2317_v59 = vpop.f32.mrb[32].mxu1  ;;  %v2357_v28 = vpop.f32.mrb[40].mxu0 }
 0x466   : > { %v2318_v4 = vpop.f32.mrb[33].mxu1  ;;  %v2358_v3 = vpop.f32.mrb[41].mxu0 }
 0x467   : > { %v2319_v6 = vadd.f32 %v2318_v4, %v2317_v59  ;;  %v2359_v54 = vadd.f32 %v2358_v3, %v2357_v28  ;;  %v2320_v8 = vpop.f32.mrb[34].mxu1  ;;  %v2360_v11 = vpop.f32.mrb[42].mxu0 }
 0x468   : > { %v2321_v13 = vpop.f32.mrb[35].mxu1  ;;  %v2361_v14 = vpop.f32.mrb[43].mxu0 }
 0x469   : > { %v1746_v15 = vadd.f32 %v2319_v6, %v1511_v63  ;;  %v2322_v19 = vadd.f32 %v2321_v13, %v2320_v8  ;;  %v2362_v2 = vadd.f32 %v2361_v14, %v2360_v11  ;;  %v2577_v6 = vld [vmem:[%s2667_s25 + $0x18] sm:$0xff]  }
 0x46a   : > { %v1518_v14 = vunpack.c.h.bf16 %v2577_v6 }
 0x46b   : > { %v3062_v20 = vadd.f32 %v2359_v54, %v1746_v15  ;;  %v1749_v56 = vadd.f32 %v2322_v19, %v1512_v58  ;;  %v1517_v54 = vunpack.c.l.bf16 %v2577_v6 }
 0x46d   : > { %v1849_v7 = vmin.f32 %v3062_v20, 0.0  ;;  %v3065_v9 = vadd.f32 %v2362_v2, %v1749_v56  ;;  %v2323_v57 = vpop.f32.mrb[36].mxu1  ;;  %v2363_v23 = vpop.f32.mrb[44].mxu0  ;;  %vm1841_vm10 = vcmp.gt.f32.partialorder %v3062_v20, 0.0 }
 0x46e   : > { %v2324_v12 = vpop.f32.mrb[37].mxu1  ;;  %v2364_v27 = vpop.f32.mrb[45].mxu0 }
 0x46f   : > { %v1857_v10 = vmul.f32 1.442695, %v1849_v7  ;;  %v1850_v29 = vmin.f32 %v3065_v9, 0.0  ;;  %v2325_v18 = vadd.f32 %v2324_v12, %v2323_v57  ;;  %v2326_v38 = vpop.f32.mrb[38].mxu1  ;;  %v2366_v30 = vpop.f32.mrb[46].mxu0  ;;  %v2365_v31 = vadd.f32 %v2364_v27, %v2363_v23 }
 0x470   : > { %v2327_v39 = vpop.f32.mrb[39].mxu1  ;;  %v2367_v44 = vpop.f32.mrb[47].mxu0  ;;  %vm1842_vm11 = vcmp.gt.f32.partialorder %v3065_v9, 0.0 }
 0x471   : > { %2552 = vpow2.f32 %v1857_v10  ;;  %v1859_v32 = vmul.f32 1.442695, %v1850_v29  ;;  %v1754_v33 = vadd.f32 %v2325_v18, %v1513_v26  ;;  %v2328_v35 = vadd.f32 %v2327_v39, %v2326_v38 }
 0x472   : > { %v2368_v36 = vadd.f32 %v2367_v44, %v2366_v30 }
 0x473   : > { %2554 = vpow2.f32 %v1859_v32  ;;  %v3069_v17 = vadd.f32 %v2365_v31, %v1754_v33  ;;  %v1757_v34 = vadd.f32 %v2328_v35, %v1514_v43 }
 0x475   : > { %v1851_v37 = vmin.f32 %v3069_v17, 0.0  ;;  %v3072_v40 = vadd.f32 %v2368_v36, %v1757_v34  ;;  %v2329_v22 = vpop.f32.mrb[40].mxu1  ;;  %v2369_v41 = vpop.f32.mrb[48].mxu0  ;;  %vm1843_vm12 = vcmp.gt.f32.partialorder %v3069_v17, 0.0 }
 0x476   : > { %v2330_v62 = vpop.f32.mrb[41].mxu1  ;;  %v2370_v51 = vpop.f32.mrb[49].mxu0 }
 0x477   : > { %v1861_v52 = vmul.f32 1.442695, %v1851_v37  ;;  %v1852_v53 = vmin.f32 %v3072_v40, 0.0  ;;  %v2331_v55 = vadd.f32 %v2330_v62, %v2329_v22  ;;  %v2332_v60 = vpop.f32.mrb[42].mxu1  ;;  %v2372_v46 = vpop.f32.mrb[50].mxu0  ;;  %v2371_v48 = vadd.f32 %v2370_v51, %v2369_v41 }
 0x478   : > { %v2333_v5 = vpop.f32.mrb[43].mxu1  ;;  %v2373_v0 = vpop.f32.mrb[51].mxu0  ;;  %vm1844_vm13 = vcmp.gt.f32.partialorder %v3072_v40, 0.0 }
 0x479   : > { %2556 = vpow2.f32 %v1861_v52  ;;  %v1863_v47 = vmul.f32 1.442695, %v1852_v53  ;;  %v1762_v50 = vadd.f32 %v2331_v55, %v1515_v45  ;;  %v2334_v1 = vadd.f32 %v2333_v5, %v2332_v60  ;;  %v2205_v5 = vld [vmem:[%s3116_s8] ss:$0 sm:$0xff] }
 0x47a   : > { %v2374_v21 = vadd.f32 %v2373_v0, %v2372_v46 }
 0x47b   : > { %v2553_v61 = vpop.eup %2552  ;;  %2558 = vpow2.f32 %v1863_v47  ;;  %v1827_v16 = vadd.f32 %v2371_v48, %v1762_v50  ;;  %v1765_v24 = vadd.f32 %v2334_v1, %v1516_v49 }
 0x47c   : > { %v2197_v63 = vadd.f32 -1.0, %v2553_v61 }
 0x47d   : > { %v2555_v59 = vpop.eup %2554  ;;  %v1853_v28 = vmin.f32 %v1827_v16, 0.0  ;;  %v1830_v4 = vadd.f32 %v2374_v21, %v1765_v24  ;;  %v2335_v3 = vpop.f32.mrb[44].mxu1  ;;  %vm1845_vm14 = vcmp.gt.f32.partialorder %v1827_v16, 0.0 }
 0x47e   : > { %v2375_v58 = vpop.f32.mrb[52].mxu0  ;;  %v2198_v8 = vadd.f32 -1.0, %v2555_v59  ;;  %v2336_v11 = vpop.f32.mrb[45].mxu1  ;;  %v1881_v57 = vsel %vm1841_vm10, %v3062_v20, %v2197_v63 }
 0x47f   : > { %v2376_v13 = vpop.f32.mrb[53].mxu0  ;;  %v1865_v15 = vmul.f32 1.442695, %v1853_v28  ;;  %v1854_v19 = vmin.f32 %v1830_v4, 0.0  ;;  %v2337_v2 = vadd.f32 %v2336_v11, %v2335_v3  ;;  %v2338_v56 = vpop.f32.mrb[46].mxu1  ;;  %vm1846_vm15 = vcmp.gt.f32.partialorder %v1830_v4, 0.0 }
 0x480   : > { %v2378_v7 = vpop.f32.mrb[54].mxu0  ;;  %v1882_v23 = vsel %vm1842_vm11, %v3065_v9, %v2198_v8  ;;  %v2377_v25 = vadd.f32 %v2376_v13, %v2375_v58  ;;  %v2339_v26 = vpop.f32.mrb[47].mxu1 }
 0x481   : > { %v2379_v12 = vpop.f32.mrb[55].mxu0  ;;  %2560 = vpow2.f32 %v1865_v15  ;;  %v1867_v27 = vmul.f32 1.442695, %v1854_v19  ;;  %v1770_v10 = vadd.f32 %v2337_v2, %v1517_v54  ;;  %v2340_v29 = vadd.f32 %v2339_v26, %v2338_v56 }
 0x482   : > { %v2380_v18 = vadd.f32 %v2379_v12, %v2378_v7  ;;  %v1889_v38 = vpack.c.bf16 %v1882_v23, %v1881_v57 }
 0x483   : > { %v2557_v30 = vpop.eup %2556  ;;  %2562 = vpow2.f32 %v1867_v27  ;;  %v1835_v43 = vadd.f32 %v2377_v25, %v1770_v10  ;;  %v1773_v31 = vadd.f32 %v2340_v29, %v1518_v14 }
 0x484   : > { %v2199_v39 = vadd.f32 -1.0, %v2557_v30  ;;  %2403 = vmatprep.mubr.msk.bf16.mxu1 %vm452_vm0, %v1889_v38 }
 0x485   : > { %v2559_v44 = vpop.eup %2558  ;;  %v1855_v20 = vmin.f32 %v1835_v43, 0.0  ;;  %v1838_v32 = vadd.f32 %v2380_v18, %v1773_v31  ;;  %vm1847_vm1 = vcmp.gt.f32.partialorder %v1835_v43, 0.0 }
 0x486   : > { %v2200_v9 = vadd.f32 -1.0, %v2559_v44  ;;  %v1883_v36 = vsel %vm1843_vm12, %v3069_v17, %v2199_v39 }
 0x487   : > { %v1869_v33 = vmul.f32 1.442695, %v1855_v20  ;;  %v1856_v35 = vmin.f32 %v1838_v32, 0.0  ;;  %vm1848_vm2 = vcmp.gt.f32.partialorder %v1838_v32, 0.0 }
 0x488   : > { %v1884_v34 = vsel %vm1844_vm13, %v3072_v40, %v2200_v9 }
 0x489   : > { %v1890_v37 = vpack.c.bf16 %v1884_v34, %v1883_v36  ;;  %2564 = vpow2.f32 %v1869_v33  ;;  %v1871_v22 = vmul.f32 1.442695, %v1856_v35 }
 0x48b   : > { %v2561_v41 = vpop.eup %2560  ;;  %2566 = vpow2.f32 %v1871_v22  ;;  %2404 = vmatmul.mubr.msk.bf16.vlgmr.msra.gmra.mrb[48].mxu1 %vm452_vm0, %v1890_v37 }
 0x48c   : > { %v2201_v42 = vadd.f32 -1.0, %v2561_v41 }
 0x48d   : > { %v2563_v45 = vpop.eup %2562 }
 0x48e   : > { %v2202_v62 = vadd.f32 -1.0, %v2563_v45  ;;  %v1885_v51 = vsel %vm1845_vm14, %v1827_v16, %v2201_v42 }
 0x490   : > { %v1886_v52 = vsel %vm1846_vm15, %v1830_v4, %v2202_v62 }
 0x491   : > { %v1891_v53 = vpack.c.bf16 %v1886_v52, %v1885_v51 }
 0x493   : > { %v2565_v55 = vpop.eup %2564  ;;  %2407 = vmatprep.mubr.msk.bf16.mxu1 %vm452_vm0, %v1891_v53 }
 0x494   : > { %v2203_v17 = vadd.f32 -1.0, %v2565_v55 }
 0x495   : > { %v2567_v40 = vpop.eup %2566 }
 0x496   : > { %v2204_v60 = vadd.f32 -1.0, %v2567_v40  ;;  %v1887_v46 = vsel %vm1847_vm1, %v1835_v43, %v2203_v17 }
 0x498   : > { %v1888_v49 = vsel %vm1848_vm2, %v1838_v32, %v2204_v60 }
 0x499   : > { %v1892_v48 = vpack.c.bf16 %v1888_v49, %v1887_v46 }
 0x49b   : > { %2408 = vmatmul.mubr.msk.bf16.gmra.mrb[52].mxu1 %vm452_vm0, %v1892_v48 }
 0x55e   : > { %v2405_v0 = vpop.f32.mrb[48].mxu1 }
 0x55f   : > { %v1971_v47 = vadd.f32 %v2405_v0, %v2205_v5  ;;  %v1962_v50 = vpop.f32.mrb[49].mxu1 }
 0x560   : > { %v1963_v1 = vadd.f32 %v2205_v5, %v1962_v50  ;;  %v2406_v21 = vpop.f32.mrb[50].mxu1 }
 0x561   : > { %1995 = vst.msk [vmem:[%s381_s17 + $0x10] sm:$0xff] %vm452_vm0, %v1971_v47  ;;  %v1974_v61 = vadd.f32 %v2406_v21, %v2205_v5  ;;  %v1965_v16 = vpop.f32.mrb[51].mxu1 }
 0x562   : > { %1993 = vst.msk [vmem:[%s381_s17] sm:$0xff] %vm452_vm0, %v1963_v1  ;;  %v1966_v24 = vadd.f32 %v2205_v5, %v1965_v16 }
 0x563   : > { %1996 = vst.msk [vmem:[%s381_s17 + $0x18] sm:$0xff] %vm452_vm0, %v1974_v61 }
 0x564   : > { %1994 = vst.msk [vmem:[%s381_s17 + $0x8] sm:$0xff] %vm452_vm0, %v1966_v24 }
 0x56e   : > { %v2409_v63 = vpop.f32.mrb[52].mxu1 }
 0x56f   : > { %v1987_v59 = vadd.f32 %v2409_v63, %v2205_v5  ;;  %v1978_v28 = vpop.f32.mrb[53].mxu1 }
 0x570   : > { %v1979_v4 = vadd.f32 %v2205_v5, %v1978_v28  ;;  %v2410_v3 = vpop.f32.mrb[54].mxu1 }
 0x571   : > { %1999 = vst.msk [vmem:[%s381_s17 + $0x30] sm:$0xff] %vm452_vm0, %v1987_v59  ;;  %v1990_v58 = vadd.f32 %v2410_v3, %v2205_v5  ;;  %v1981_v6 = vpop.f32.mrb[55].mxu1 }
 0x572   : > { %1997 = vst.msk [vmem:[%s381_s17 + $0x20] sm:$0xff] %vm452_vm0, %v1979_v4  ;;  %v1982_v54 = vadd.f32 %v2205_v5, %v1981_v6 }
 0x573   : > { %2000 = vst.msk [vmem:[%s381_s17 + $0x38] sm:$0xff] %vm452_vm0, %v1990_v58 }
 0x574   : > { %1998 = vst.msk [vmem:[%s381_s17 + $0x28] sm:$0xff] %vm452_vm0, %v1982_v54 }
 0x575 PF: > { %s19_s30 = sadd.s32 1, %s2584_s30  }
 0x576   : > { %p16_p4 = scmp.ge.s32.totalorder %s19_s30, 6  }
 0x578   :  { %18 = sbr.rel (!%p16_p4) target bundleno = 1 (0x1), region = 92 }

</bundles_post_ra>
